<compile_context>
chip_gen: v6e
topology: v6e:2x2x1
jax: 0.10.0
libtpu: 0.0.40
codegen_flags: <defaults>
</compile_context>

<pallas_src>
import functools

import jax
import jax.numpy as jnp
from jax import lax
from jax.experimental import pallas as pl
from jax.experimental.pallas import tpu as pltpu

BN_EPS = 1e-5
LANE = 128
SUBLANE_BF16 = 16   # bf16 packs 16 rows per (16,128) vreg tile


# ----------------------------------------------------------------------------
# helpers
# ----------------------------------------------------------------------------
def _round_up(n, m):
    return -(-n // m) * m


def _pad_to(a, axis, target):
    pad = target - a.shape[axis]
    if pad <= 0:
        return a
    widths = [(0, 0)] * a.ndim
    widths[axis] = (0, pad)
    return jnp.pad(a, widths)


# ----------------------------------------------------------------------------
# parameter preparation: fold BN, pad to lane width, pack into stacked arrays
# ----------------------------------------------------------------------------
def pack_params(params, *, compute_dtype=jnp.bfloat16):
    """Fold eval-mode BatchNorm into the following Linear, zero-pad feature dims
    to 128 lanes, and pack per-block params into 4 stacked arrays."""
    (w_in, b_in,
     g1, be1, m1, v1, w1, b1,
     g2, be2, m2, v2, w2, b2,
     w_out, b_out) = params

    # BN(h) = h*scale + shift  =>  BN(h) @ W + b = h @ (scale^T * W) + (shift @ W + b)
    s1 = g1 * lax.rsqrt(v1 + BN_EPS)                          # (nb, 1, H)
    sh1 = be1 - m1 * s1
    s2 = g2 * lax.rsqrt(v2 + BN_EPS)
    sh2 = be2 - m2 * s2

    w1f = jnp.swapaxes(s1, 1, 2) * w1                         # scale input rows
    b1f = jnp.einsum('nij,njk->nik', sh1, w1) + b1             # (nb, 1, H)
    w2f = jnp.swapaxes(s2, 1, 2) * w2
    b2f = jnp.einsum('nij,njk->nik', sh2, w2) + b2

    in_dim, hid = w_in.shape
    out_dim = w_out.shape[1]
    # NOTE: for hidden dims > 128 on v6e/v7x, padding to a 256 multiple better
    # fills the 256x256 MXU; at hidden_dim <= 128 (this model) 128 is right.
    ip, hp, op = (_round_up(d, LANE) for d in (in_dim, hid, out_dim))

    # zero-padding keeps padded lanes at exactly 0 through the whole network
    w_in_p = _pad_to(_pad_to(w_in, 0, ip), 1, hp)
    b_in_p = _pad_to(b_in, 1, hp)
    w1p = _pad_to(_pad_to(w1f, 1, hp), 2, hp)                  # (nb, Hp, Hp)
    w2p = _pad_to(_pad_to(w2f, 1, hp), 2, hp)
    b1p = _pad_to(b1f, 2, hp)                                  # (nb, 1, Hp)
    b2p = _pad_to(b2f, 2, hp)
    w_out_p = _pad_to(_pad_to(w_out, 0, hp), 1, op)
    b_out_p = _pad_to(b_out, 1, op)

    return (w_in_p.astype(compute_dtype),
            b_in_p.astype(jnp.float32),
            w1p.astype(compute_dtype),
            b1p.astype(jnp.float32),
            w2p.astype(compute_dtype),
            b2p.astype(jnp.float32),
            w_out_p.astype(compute_dtype),
            b_out_p.astype(jnp.float32))


# ----------------------------------------------------------------------------
# kernel
# ----------------------------------------------------------------------------
def _resnet_kernel(x_ref, w_in_ref, b_in_ref, w1_ref, b1_ref, w2_ref, b2_ref,
                   w_out_ref, b_out_ref, o_ref, h_ref, *, num_blocks):
    cdt = w_in_ref.dtype                                       # bf16 for the MXU

    # input map: h = x @ W_in + b_in   (x already bf16 from the wrapper)
    h_ref[...] = (jnp.dot(x_ref[...], w_in_ref[...],
                          preferred_element_type=jnp.float32) + b_in_ref[...])

    def block_body(blk, carry):
        w1 = w1_ref[blk]                                       # (Hp, Hp) bf16, VMEM-resident
        w2 = w2_ref[blk]
        b1 = b1_ref[blk]                                       # (1, Hp) f32
        b2 = b2_ref[blk]
        # BN already folded into w/b -> pure dot + bias + relu.
        h1 = jnp.maximum(
            jnp.dot(h_ref[...].astype(cdt), w1,
                    preferred_element_type=jnp.float32) + b1, 0.0)
        h2 = jnp.dot(h1.astype(cdt), w2, preferred_element_type=jnp.float32) + b2
        # Residual = second read of h_ref (unchanged since the first read); avoids
        # carrying a (tile_b, Hp) f32 value across both matmuls (vreg pressure).
        # Dropout is identity in eval mode.
        h_ref[...] = jnp.maximum(h2 + h_ref[...], 0.0)
        return carry

    lax.fori_loop(0, num_blocks, block_body, 0, unroll=True)

    # output layer
    o_ref[...] = (jnp.dot(h_ref[...].astype(cdt), w_out_ref[...],
                          preferred_element_type=jnp.float32)
                  + b_out_ref[...]).astype(o_ref.dtype)


def resnet_forward(x, packed, *, out_dim, tile_b=128, interpret=False):
    """Grid: (batch tiles ['parallel'],); residual blocks looped inside the kernel."""
    (w_in, b_in, w1_blk, b1_blk, w2_blk, b2_blk, w_out, b_out) = packed
    batch = x.shape[0]
    nb = w1_blk.shape[0]
    ip, hp = w_in.shape
    op = w_out.shape[1]
    assert nb >= 1

    # Batch padding / tiling:
    #  * rows padded to a multiple of 16 (bf16 (16,128) vreg packing)
    #  * aim for >= 2 batch tiles so v7x's 2 TensorCores both get work on the
    #    "parallel" axis (harmless on single-TC v5e/v6e).
    bp = _round_up(max(batch, 1), SUBLANE_BF16)
    if bp >= 2 * SUBLANE_BF16:
        tile_b = min(tile_b, _round_up(pl.cdiv(bp, 2), SUBLANE_BF16))
    else:
        tile_b = bp
    bp = _round_up(bp, tile_b)

    # pre-cast x to bf16 in the wrapper (halves the x DMA, removes in-kernel cast)
    xp = _pad_to(_pad_to(x, 1, ip), 0, bp).astype(w_in.dtype)

    # VMEM footprint (weights resident; x/out tiles double-buffered by pipeline)
    vmem_needed = (2 * tile_b * ip * 2                 # x tiles (bf16, 2 bufs)
                   + ip * hp * 2 + hp * 4              # W_in, b_in
                   + 2 * nb * hp * hp * 2              # block weights (bf16)
                   + 2 * nb * hp * 4                   # block biases (f32)
                   + hp * op * 2 + op * 4              # W_out, b_out
                   + 2 * tile_b * op * 4               # out tiles (f32, 2 bufs)
                   + tile_b * hp * 4)                  # h scratch (f32)
    if vmem_needed > 48 * 1024 * 1024:
        # TODO(synk): streamed-weight variant for large hidden_dim/num_blocks.
        raise NotImplementedError(
            f"resident-weight kernel needs ~{vmem_needed / 2**20:.1f} MiB VMEM; "
            "a streamed-weight variant is required at this size")
    vmem_limit = int(min(max(2 * vmem_needed, 32 * 1024 * 1024), 56 * 1024 * 1024))

    flops = 2 * bp * (ip * hp + 2 * nb * hp * hp + hp * op)
    bytes_accessed = (xp.size * 2 + bp * op * 4
                      + (w_in.size + w1_blk.size + w2_blk.size + w_out.size) * 2
                      + (b_in.size + b1_blk.size + b2_blk.size + b_out.size) * 4)

    grid = (bp // tile_b,)
    kernel = functools.partial(_resnet_kernel, num_blocks=nb)

    out_padded = pl.pallas_call(
        kernel,
        out_shape=jax.ShapeDtypeStruct((bp, op), jnp.float32),
        grid=grid,
        in_specs=[
            pl.BlockSpec((tile_b, ip), lambda i: (i, 0)),        # x: per batch tile
            pl.BlockSpec((ip, hp), lambda i: (0, 0)),            # W_in (resident)
            pl.BlockSpec((1, hp), lambda i: (0, 0)),             # b_in
            pl.BlockSpec((nb, hp, hp), lambda i: (0, 0, 0)),     # W1 stack (resident)
            pl.BlockSpec((nb, 1, hp), lambda i: (0, 0, 0)),      # b1 stack
            pl.BlockSpec((nb, hp, hp), lambda i: (0, 0, 0)),     # W2 stack (resident)
            pl.BlockSpec((nb, 1, hp), lambda i: (0, 0, 0)),      # b2 stack
            pl.BlockSpec((hp, op), lambda i: (0, 0)),            # W_out (resident)
            pl.BlockSpec((1, op), lambda i: (0, 0)),             # b_out
        ],
        out_specs=pl.BlockSpec((tile_b, op), lambda i: (i, 0)),
        scratch_shapes=[pltpu.VMEM((tile_b, hp), jnp.float32)],  # h carried over blocks
        compiler_params=pltpu.CompilerParams(
            dimension_semantics=("parallel",),
            vmem_limit_bytes=vmem_limit),
        cost_estimate=pl.CostEstimate(flops=flops, transcendentals=0,
                                      bytes_accessed=bytes_accessed),
        interpret=interpret,
    )(xp, w_in, b_in, w1_blk, b1_blk, w2_blk, b2_blk, w_out, b_out)

    return out_padded[:batch, :out_dim]


# ----------------------------------------------------------------------------
# parameter init (mirrors the PyTorch __init__: xavier weights, zero biases;
# BN params/running stats randomized so the BN math is actually exercised)
# ----------------------------------------------------------------------------
def init_params(key, input_dim, hidden_dim, output_dim, num_blocks):
    def xavier(k, fan_in, fan_out):
        bound = (6.0 / (fan_in + fan_out)) ** 0.5
        return jax.random.uniform(k, (fan_in, fan_out), jnp.float32, -bound, bound)

    keys = iter(jax.random.split(key, 4 + 12 * num_blocks))

    w_in = xavier(next(keys), input_dim, hidden_dim)
    b_in = jnp.zeros((1, hidden_dim), jnp.float32)

    g1, be1, m1, v1, w1, b1 = [], [], [], [], [], []
    g2, be2, m2, v2, w2, b2 = [], [], [], [], [], []
    for _ in range(num_blocks):
        g1.append(jax.random.uniform(next(keys), (1, hidden_dim), jnp.float32, 0.5, 1.5))
        be1.append(0.1 * jax.random.normal(next(keys), (1, hidden_dim), jnp.float32))
        m1.append(0.1 * jax.random.normal(next(keys), (1, hidden_dim), jnp.float32))
        v1.append(jax.random.uniform(next(keys), (1, hidden_dim), jnp.float32, 0.5, 1.5))
        w1.append(xavier(next(keys), hidden_dim, hidden_dim))
        b1.append(jnp.zeros((1, hidden_dim), jnp.float32))

        g2.append(jax.random.uniform(next(keys), (1, hidden_dim), jnp.float32, 0.5, 1.5))
        be2.append(0.1 * jax.random.normal(next(keys), (1, hidden_dim), jnp.float32))
        m2.append(0.1 * jax.random.normal(next(keys), (1, hidden_dim), jnp.float32))
        v2.append(jax.random.uniform(next(keys), (1, hidden_dim), jnp.float32, 0.5, 1.5))
        w2.append(xavier(next(keys), hidden_dim, hidden_dim))
        b2.append(jnp.zeros((1, hidden_dim), jnp.float32))

    w_out = xavier(next(keys), hidden_dim, output_dim)
    b_out = jnp.zeros((1, output_dim), jnp.float32)

    stack = lambda xs: jnp.stack(xs, axis=0)
    return (w_in, b_in,
            stack(g1), stack(be1), stack(m1), stack(v1), stack(w1), stack(b1),
            stack(g2), stack(be2), stack(m2), stack(v2), stack(w2), stack(b2),
            w_out, b_out)


# ----------------------------------------------------------------------------
# references
# ----------------------------------------------------------------------------
def resnet_reference(x, params, *, num_blocks):
    """Pure f32 reference matching the PyTorch eval-mode math exactly."""
    (w_in, b_in, g1, be1, m1, v1, w1, b1,
     g2, be2, m2, v2, w2, b2, w_out, b_out) = params
    h = x @ w_in + b_in
    for i in range(num_blocks):
        r = h
        hn = (h - m1[i]) / jnp.sqrt(v1[i] + BN_EPS) * g1[i] + be1[i]
        h1 = jnp.maximum(hn @ w1[i] + b1[i], 0.0)
        hn2 = (h1 - m2[i]) / jnp.sqrt(v2[i] + BN_EPS) * g2[i] + be2[i]
        h2 = hn2 @ w2[i] + b2[i]
        h = jnp.maximum(h2 + r, 0.0)
    return h @ w_out + b_out


def resnet_reference_packed(x, packed, *, out_dim):
    """Reference mirroring the kernel's folded-BN / bf16 / padded math."""
    (w_in, b_in, w1_blk, b1_blk, w2_blk, b2_blk, w_out, b_out) = packed
    cdt = w_in.dtype
    xp = _pad_to(x, 1, w_in.shape[0]).astype(cdt)
    h = jnp.dot(xp, w_in, preferred_element_type=jnp.float32) + b_in
    for i in range(w1_blk.shape[0]):
        r = h
        h1 = jnp.maximum(
            jnp.dot(h.astype(cdt), w1_blk[i], preferred_element_type=jnp.float32)
            + b1_blk[i], 0.0)
        h2 = jnp.dot(h1.astype(cdt), w2_blk[i], preferred_element_type=jnp.float32) + b2_blk[i]
        h = jnp.maximum(h2 + r, 0.0)
    out = jnp.dot(h.astype(cdt), w_out, preferred_element_type=jnp.float32) + b_out
    return out[:, :out_dim]


# ----------------------------------------------------------------------------
# main
# ----------------------------------------------------------------------------
if __name__ == "__main__":
    # toy dims consistent with the module; wrapper zero-pads features to 128 lanes
    batch, input_dim, hidden_dim, output_dim, num_blocks = 256, 16, 32, 8, 6

    key = jax.random.PRNGKey(0)
    kx, kp = jax.random.split(key)
    x = jax.random.normal(kx, (batch, input_dim), jnp.float32)
    params = init_params(kp, input_dim, hidden_dim, output_dim, num_blocks)

    packed = pack_params(params)
    out = resnet_forward(x, packed, out_dim=output_dim)
    out = jax.block_until_ready(out)
    assert out.shape == (batch, output_dim)

    # tight check vs a reference that mirrors the kernel's folded/bf16 math
    ref_packed = resnet_reference_packed(x, packed, out_dim=output_dim)
    assert jnp.allclose(out, ref_packed, atol=2e-3, rtol=2e-3), \
        "mismatch vs folded-BN bf16 reference"

    # end-to-end sanity vs the pure-f32 PyTorch-eval reference (bf16 quantization only)
    ref_f32 = resnet_reference(x, params, num_blocks=num_blocks)
    rel = jnp.linalg.norm(out - ref_f32) / (jnp.linalg.norm(ref_f32) + 1e-12)
    assert float(rel) < 8e-2, f"bf16 path drifted too far from f32 reference: rel={float(rel)}"

    print("KERNEL_OK")
</pallas_src>

<mosaic_0001>
module attributes {stable_mosaic.version = 11 : i64} {
  func.func @_resnet_kernel(%arg0: i32, %arg1: memref<128x128xbf16, #tpu.memory_space<vmem>>, %arg2: memref<128x128xbf16, #tpu.memory_space<vmem>>, %arg3: memref<1x128xf32, #tpu.memory_space<vmem>>, %arg4: memref<6x128x128xbf16, #tpu.memory_space<vmem>>, %arg5: memref<6x1x128xf32, #tpu.memory_space<vmem>>, %arg6: memref<6x128x128xbf16, #tpu.memory_space<vmem>>, %arg7: memref<6x1x128xf32, #tpu.memory_space<vmem>>, %arg8: memref<128x128xbf16, #tpu.memory_space<vmem>>, %arg9: memref<1x128xf32, #tpu.memory_space<vmem>>, %arg10: memref<128x128xf32, #tpu.memory_space<vmem>>, %arg11: memref<128x128xf32, #tpu.memory_space<vmem>>) attributes {dimension_semantics = [#tpu.dimension_semantics<parallel>], iteration_bounds = array<i64: 2>, scalar_prefetch = 0 : i64, scratch_operands = 1 : i64, tpu.core_type = #tpu.core_type<tc>, window_params = [{transform_indices = @transform_0, window_bounds = array<i64: 128, 128>}, {pipeline_mode = #tpu.pipeline_mode<synchronous>, transform_indices = @transform_1, window_bounds = array<i64: 128, 128>}, {pipeline_mode = #tpu.pipeline_mode<synchronous>, transform_indices = @transform_2, window_bounds = array<i64: 1, 128>}, {pipeline_mode = #tpu.pipeline_mode<synchronous>, transform_indices = @transform_3, window_bounds = array<i64: 6, 128, 128>}, {pipeline_mode = #tpu.pipeline_mode<synchronous>, transform_indices = @transform_4, window_bounds = array<i64: 6, 1, 128>}, {pipeline_mode = #tpu.pipeline_mode<synchronous>, transform_indices = @transform_5, window_bounds = array<i64: 6, 128, 128>}, {pipeline_mode = #tpu.pipeline_mode<synchronous>, transform_indices = @transform_6, window_bounds = array<i64: 6, 1, 128>}, {pipeline_mode = #tpu.pipeline_mode<synchronous>, transform_indices = @transform_7, window_bounds = array<i64: 128, 128>}, {pipeline_mode = #tpu.pipeline_mode<synchronous>, transform_indices = @transform_8, window_bounds = array<i64: 1, 128>}, {transform_indices = @transform_9, window_bounds = array<i64: 128, 128>}]} {
    %c0 = arith.constant 0 : index
    %c0_0 = arith.constant 0 : index
    %0 = vector.load %arg1[%c0, %c0_0] : memref<128x128xbf16, #tpu.memory_space<vmem>>, vector<128x128xbf16>
    %c0_1 = arith.constant 0 : index
    %c0_2 = arith.constant 0 : index
    %1 = vector.load %arg2[%c0_1, %c0_2] : memref<128x128xbf16, #tpu.memory_space<vmem>>, vector<128x128xbf16>
    %cst = arith.constant dense<0.000000e+00> : vector<128x128xf32>
    %2 = tpu.matmul %0, %1, %cst {dimension_numbers = #tpu.dot_dimension_numbers<[1], [0], [0], [1], [0, 0, 1, 1], [], []>} : vector<128x128xbf16>, vector<128x128xbf16>, vector<128x128xf32> -> vector<128x128xf32>
    %c0_3 = arith.constant 0 : index
    %c0_4 = arith.constant 0 : index
    %3 = vector.load %arg3[%c0_3, %c0_4] : memref<1x128xf32, #tpu.memory_space<vmem>>, vector<1x128xf32>
    %4 = vector.broadcast %3 : vector<1x128xf32> to vector<128x128xf32>
    %5 = arith.addf %2, %4 : vector<128x128xf32>
    %c0_5 = arith.constant 0 : index
    %c0_6 = arith.constant 0 : index
    %6 = vector.load %arg11[%c0_5, %c0_6] : memref<128x128xf32, #tpu.memory_space<vmem>>, vector<128x128xf32>
    tpu.vector_store %arg11[%c0_5, %c0_6], %5 {strides = array<i32>} : memref<128x128xf32, #tpu.memory_space<vmem>>, vector<128x128xf32>,
    %c0_i32 = arith.constant 0 : i32
    %7 = arith.index_cast %c0_i32 : i32 to index
    %c0_7 = arith.constant 0 : index
    %c0_8 = arith.constant 0 : index
    %8 = vector.load %arg4[%7, %c0_7, %c0_8] : memref<6x128x128xbf16, #tpu.memory_space<vmem>>, vector<1x128x128xbf16>
    %9 = vector.shape_cast %8 : vector<1x128x128xbf16> to vector<128x128xbf16>
    %10 = arith.index_cast %c0_i32 : i32 to index
    %c0_9 = arith.constant 0 : index
    %c0_10 = arith.constant 0 : index
    %11 = vector.load %arg6[%10, %c0_9, %c0_10] : memref<6x128x128xbf16, #tpu.memory_space<vmem>>, vector<1x128x128xbf16>
    %12 = vector.shape_cast %11 : vector<1x128x128xbf16> to vector<128x128xbf16>
    %13 = arith.index_cast %c0_i32 : i32 to index
    %c0_11 = arith.constant 0 : index
    %c0_12 = arith.constant 0 : index
    %14 = vector.load %arg5[%13, %c0_11, %c0_12] : memref<6x1x128xf32, #tpu.memory_space<vmem>>, vector<1x1x128xf32>
    %15 = vector.shape_cast %14 : vector<1x1x128xf32> to vector<1x128xf32>
    %16 = arith.index_cast %c0_i32 : i32 to index
    %c0_13 = arith.constant 0 : index
    %c0_14 = arith.constant 0 : index
    %17 = vector.load %arg7[%16, %c0_13, %c0_14] : memref<6x1x128xf32, #tpu.memory_space<vmem>>, vector<1x1x128xf32>
    %18 = vector.shape_cast %17 : vector<1x1x128xf32> to vector<1x128xf32>
    %c0_15 = arith.constant 0 : index
    %c0_16 = arith.constant 0 : index
    %19 = vector.load %arg11[%c0_15, %c0_16] : memref<128x128xf32, #tpu.memory_space<vmem>>, vector<128x128xf32>
    %20 = arith.truncf %19 : vector<128x128xf32> to vector<128x128xbf16>
    %cst_17 = arith.constant dense<0.000000e+00> : vector<128x128xf32>
    %21 = tpu.matmul %20, %9, %cst_17 {dimension_numbers = #tpu.dot_dimension_numbers<[1], [0], [0], [1], [0, 0, 1, 1], [], []>} : vector<128x128xbf16>, vector<128x128xbf16>, vector<128x128xf32> -> vector<128x128xf32>
    %22 = vector.broadcast %15 : vector<1x128xf32> to vector<128x128xf32>
    %23 = arith.addf %21, %22 : vector<128x128xf32>
    %cst_18 = arith.constant 0.000000e+00 : f32
    %24 = vector.broadcast %cst_18 : f32 to vector<128x128xf32>
    %25 = arith.maximumf %23, %24 : vector<128x128xf32>
    %26 = arith.truncf %25 : vector<128x128xf32> to vector<128x128xbf16>
    %cst_19 = arith.constant dense<0.000000e+00> : vector<128x128xf32>
    %27 = tpu.matmul %26, %12, %cst_19 {dimension_numbers = #tpu.dot_dimension_numbers<[1], [0], [0], [1], [0, 0, 1, 1], [], []>} : vector<128x128xbf16>, vector<128x128xbf16>, vector<128x128xf32> -> vector<128x128xf32>
    %28 = vector.broadcast %18 : vector<1x128xf32> to vector<128x128xf32>
    %29 = arith.addf %27, %28 : vector<128x128xf32>
    %c0_20 = arith.constant 0 : index
    %c0_21 = arith.constant 0 : index
    %30 = vector.load %arg11[%c0_20, %c0_21] : memref<128x128xf32, #tpu.memory_space<vmem>>, vector<128x128xf32>
    %31 = arith.addf %29, %30 : vector<128x128xf32>
    %cst_22 = arith.constant 0.000000e+00 : f32
    %32 = vector.broadcast %cst_22 : f32 to vector<128x128xf32>
    %33 = arith.maximumf %31, %32 : vector<128x128xf32>
    %c0_23 = arith.constant 0 : index
    %c0_24 = arith.constant 0 : index
    %34 = vector.load %arg11[%c0_23, %c0_24] : memref<128x128xf32, #tpu.memory_space<vmem>>, vector<128x128xf32>
    tpu.vector_store %arg11[%c0_23, %c0_24], %33 {strides = array<i32>} : memref<128x128xf32, #tpu.memory_space<vmem>>, vector<128x128xf32>,
    %c1_i32 = arith.constant 1 : i32
    %35 = arith.index_cast %c1_i32 : i32 to index
    %c0_25 = arith.constant 0 : index
    %c0_26 = arith.constant 0 : index
    %36 = vector.load %arg4[%35, %c0_25, %c0_26] : memref<6x128x128xbf16, #tpu.memory_space<vmem>>, vector<1x128x128xbf16>
    %37 = vector.shape_cast %36 : vector<1x128x128xbf16> to vector<128x128xbf16>
    %38 = arith.index_cast %c1_i32 : i32 to index
    %c0_27 = arith.constant 0 : index
    %c0_28 = arith.constant 0 : index
    %39 = vector.load %arg6[%38, %c0_27, %c0_28] : memref<6x128x128xbf16, #tpu.memory_space<vmem>>, vector<1x128x128xbf16>
    %40 = vector.shape_cast %39 : vector<1x128x128xbf16> to vector<128x128xbf16>
    %41 = arith.index_cast %c1_i32 : i32 to index
    %c0_29 = arith.constant 0 : index
    %c0_30 = arith.constant 0 : index
    %42 = vector.load %arg5[%41, %c0_29, %c0_30] : memref<6x1x128xf32, #tpu.memory_space<vmem>>, vector<1x1x128xf32>
    %43 = vector.shape_cast %42 : vector<1x1x128xf32> to vector<1x128xf32>
    %44 = arith.index_cast %c1_i32 : i32 to index
    %c0_31 = arith.constant 0 : index
    %c0_32 = arith.constant 0 : index
    %45 = vector.load %arg7[%44, %c0_31, %c0_32] : memref<6x1x128xf32, #tpu.memory_space<vmem>>, vector<1x1x128xf32>
    %46 = vector.shape_cast %45 : vector<1x1x128xf32> to vector<1x128xf32>
    %c0_33 = arith.constant 0 : index
    %c0_34 = arith.constant 0 : index
    %47 = vector.load %arg11[%c0_33, %c0_34] : memref<128x128xf32, #tpu.memory_space<vmem>>, vector<128x128xf32>
    %48 = arith.truncf %47 : vector<128x128xf32> to vector<128x128xbf16>
    %cst_35 = arith.constant dense<0.000000e+00> : vector<128x128xf32>
    %49 = tpu.matmul %48, %37, %cst_35 {dimension_numbers = #tpu.dot_dimension_numbers<[1], [0], [0], [1], [0, 0, 1, 1], [], []>} : vector<128x128xbf16>, vector<128x128xbf16>, vector<128x128xf32> -> vector<128x128xf32>
    %50 = vector.broadcast %43 : vector<1x128xf32> to vector<128x128xf32>
    %51 = arith.addf %49, %50 : vector<128x128xf32>
    %cst_36 = arith.constant 0.000000e+00 : f32
    %52 = vector.broadcast %cst_36 : f32 to vector<128x128xf32>
    %53 = arith.maximumf %51, %52 : vector<128x128xf32>
    %54 = arith.truncf %53 : vector<128x128xf32> to vector<128x128xbf16>
    %cst_37 = arith.constant dense<0.000000e+00> : vector<128x128xf32>
    %55 = tpu.matmul %54, %40, %cst_37 {dimension_numbers = #tpu.dot_dimension_numbers<[1], [0], [0], [1], [0, 0, 1, 1], [], []>} : vector<128x128xbf16>, vector<128x128xbf16>, vector<128x128xf32> -> vector<128x128xf32>
    %56 = vector.broadcast %46 : vector<1x128xf32> to vector<128x128xf32>
    %57 = arith.addf %55, %56 : vector<128x128xf32>
    %c0_38 = arith.constant 0 : index
    %c0_39 = arith.constant 0 : index
    %58 = vector.load %arg11[%c0_38, %c0_39] : memref<128x128xf32, #tpu.memory_space<vmem>>, vector<128x128xf32>
    %59 = arith.addf %57, %58 : vector<128x128xf32>
    %cst_40 = arith.constant 0.000000e+00 : f32
    %60 = vector.broadcast %cst_40 : f32 to vector<128x128xf32>
    %61 = arith.maximumf %59, %60 : vector<128x128xf32>
    %c0_41 = arith.constant 0 : index
    %c0_42 = arith.constant 0 : index
    %62 = vector.load %arg11[%c0_41, %c0_42] : memref<128x128xf32, #tpu.memory_space<vmem>>, vector<128x128xf32>
    tpu.vector_store %arg11[%c0_41, %c0_42], %61 {strides = array<i32>} : memref<128x128xf32, #tpu.memory_space<vmem>>, vector<128x128xf32>,
    %c2_i32 = arith.constant 2 : i32
    %63 = arith.index_cast %c2_i32 : i32 to index
    %c0_43 = arith.constant 0 : index
    %c0_44 = arith.constant 0 : index
    %64 = vector.load %arg4[%63, %c0_43, %c0_44] : memref<6x128x128xbf16, #tpu.memory_space<vmem>>, vector<1x128x128xbf16>
    %65 = vector.shape_cast %64 : vector<1x128x128xbf16> to vector<128x128xbf16>
    %66 = arith.index_cast %c2_i32 : i32 to index
    %c0_45 = arith.constant 0 : index
    %c0_46 = arith.constant 0 : index
    %67 = vector.load %arg6[%66, %c0_45, %c0_46] : memref<6x128x128xbf16, #tpu.memory_space<vmem>>, vector<1x128x128xbf16>
    %68 = vector.shape_cast %67 : vector<1x128x128xbf16> to vector<128x128xbf16>
    %69 = arith.index_cast %c2_i32 : i32 to index
    %c0_47 = arith.constant 0 : index
    %c0_48 = arith.constant 0 : index
    %70 = vector.load %arg5[%69, %c0_47, %c0_48] : memref<6x1x128xf32, #tpu.memory_space<vmem>>, vector<1x1x128xf32>
    %71 = vector.shape_cast %70 : vector<1x1x128xf32> to vector<1x128xf32>
    %72 = arith.index_cast %c2_i32 : i32 to index
    %c0_49 = arith.constant 0 : index
    %c0_50 = arith.constant 0 : index
    %73 = vector.load %arg7[%72, %c0_49, %c0_50] : memref<6x1x128xf32, #tpu.memory_space<vmem>>, vector<1x1x128xf32>
    %74 = vector.shape_cast %73 : vector<1x1x128xf32> to vector<1x128xf32>
    %c0_51 = arith.constant 0 : index
    %c0_52 = arith.constant 0 : index
    %75 = vector.load %arg11[%c0_51, %c0_52] : memref<128x128xf32, #tpu.memory_space<vmem>>, vector<128x128xf32>
    %76 = arith.truncf %75 : vector<128x128xf32> to vector<128x128xbf16>
    %cst_53 = arith.constant dense<0.000000e+00> : vector<128x128xf32>
    %77 = tpu.matmul %76, %65, %cst_53 {dimension_numbers = #tpu.dot_dimension_numbers<[1], [0], [0], [1], [0, 0, 1, 1], [], []>} : vector<128x128xbf16>, vector<128x128xbf16>, vector<128x128xf32> -> vector<128x128xf32>
    %78 = vector.broadcast %71 : vector<1x128xf32> to vector<128x128xf32>
    %79 = arith.addf %77, %78 : vector<128x128xf32>
    %cst_54 = arith.constant 0.000000e+00 : f32
    %80 = vector.broadcast %cst_54 : f32 to vector<128x128xf32>
    %81 = arith.maximumf %79, %80 : vector<128x128xf32>
    %82 = arith.truncf %81 : vector<128x128xf32> to vector<128x128xbf16>
    %cst_55 = arith.constant dense<0.000000e+00> : vector<128x128xf32>
    %83 = tpu.matmul %82, %68, %cst_55 {dimension_numbers = #tpu.dot_dimension_numbers<[1], [0], [0], [1], [0, 0, 1, 1], [], []>} : vector<128x128xbf16>, vector<128x128xbf16>, vector<128x128xf32> -> vector<128x128xf32>
    %84 = vector.broadcast %74 : vector<1x128xf32> to vector<128x128xf32>
    %85 = arith.addf %83, %84 : vector<128x128xf32>
    %c0_56 = arith.constant 0 : index
    %c0_57 = arith.constant 0 : index
    %86 = vector.load %arg11[%c0_56, %c0_57] : memref<128x128xf32, #tpu.memory_space<vmem>>, vector<128x128xf32>
    %87 = arith.addf %85, %86 : vector<128x128xf32>
    %cst_58 = arith.constant 0.000000e+00 : f32
    %88 = vector.broadcast %cst_58 : f32 to vector<128x128xf32>
    %89 = arith.maximumf %87, %88 : vector<128x128xf32>
    %c0_59 = arith.constant 0 : index
    %c0_60 = arith.constant 0 : index
    %90 = vector.load %arg11[%c0_59, %c0_60] : memref<128x128xf32, #tpu.memory_space<vmem>>, vector<128x128xf32>
    tpu.vector_store %arg11[%c0_59, %c0_60], %89 {strides = array<i32>} : memref<128x128xf32, #tpu.memory_space<vmem>>, vector<128x128xf32>,
    %c3_i32 = arith.constant 3 : i32
    %91 = arith.index_cast %c3_i32 : i32 to index
    %c0_61 = arith.constant 0 : index
    %c0_62 = arith.constant 0 : index
    %92 = vector.load %arg4[%91, %c0_61, %c0_62] : memref<6x128x128xbf16, #tpu.memory_space<vmem>>, vector<1x128x128xbf16>
    %93 = vector.shape_cast %92 : vector<1x128x128xbf16> to vector<128x128xbf16>
    %94 = arith.index_cast %c3_i32 : i32 to index
    %c0_63 = arith.constant 0 : index
    %c0_64 = arith.constant 0 : index
    %95 = vector.load %arg6[%94, %c0_63, %c0_64] : memref<6x128x128xbf16, #tpu.memory_space<vmem>>, vector<1x128x128xbf16>
    %96 = vector.shape_cast %95 : vector<1x128x128xbf16> to vector<128x128xbf16>
    %97 = arith.index_cast %c3_i32 : i32 to index
    %c0_65 = arith.constant 0 : index
    %c0_66 = arith.constant 0 : index
    %98 = vector.load %arg5[%97, %c0_65, %c0_66] : memref<6x1x128xf32, #tpu.memory_space<vmem>>, vector<1x1x128xf32>
    %99 = vector.shape_cast %98 : vector<1x1x128xf32> to vector<1x128xf32>
    %100 = arith.index_cast %c3_i32 : i32 to index
    %c0_67 = arith.constant 0 : index
    %c0_68 = arith.constant 0 : index
    %101 = vector.load %arg7[%100, %c0_67, %c0_68] : memref<6x1x128xf32, #tpu.memory_space<vmem>>, vector<1x1x128xf32>
    %102 = vector.shape_cast %101 : vector<1x1x128xf32> to vector<1x128xf32>
    %c0_69 = arith.constant 0 : index
    %c0_70 = arith.constant 0 : index
    %103 = vector.load %arg11[%c0_69, %c0_70] : memref<128x128xf32, #tpu.memory_space<vmem>>, vector<128x128xf32>
    %104 = arith.truncf %103 : vector<128x128xf32> to vector<128x128xbf16>
    %cst_71 = arith.constant dense<0.000000e+00> : vector<128x128xf32>
    %105 = tpu.matmul %104, %93, %cst_71 {dimension_numbers = #tpu.dot_dimension_numbers<[1], [0], [0], [1], [0, 0, 1, 1], [], []>} : vector<128x128xbf16>, vector<128x128xbf16>, vector<128x128xf32> -> vector<128x128xf32>
    %106 = vector.broadcast %99 : vector<1x128xf32> to vector<128x128xf32>
    %107 = arith.addf %105, %106 : vector<128x128xf32>
    %cst_72 = arith.constant 0.000000e+00 : f32
    %108 = vector.broadcast %cst_72 : f32 to vector<128x128xf32>
    %109 = arith.maximumf %107, %108 : vector<128x128xf32>
    %110 = arith.truncf %109 : vector<128x128xf32> to vector<128x128xbf16>
    %cst_73 = arith.constant dense<0.000000e+00> : vector<128x128xf32>
    %111 = tpu.matmul %110, %96, %cst_73 {dimension_numbers = #tpu.dot_dimension_numbers<[1], [0], [0], [1], [0, 0, 1, 1], [], []>} : vector<128x128xbf16>, vector<128x128xbf16>, vector<128x128xf32> -> vector<128x128xf32>
    %112 = vector.broadcast %102 : vector<1x128xf32> to vector<128x128xf32>
    %113 = arith.addf %111, %112 : vector<128x128xf32>
    %c0_74 = arith.constant 0 : index
    %c0_75 = arith.constant 0 : index
    %114 = vector.load %arg11[%c0_74, %c0_75] : memref<128x128xf32, #tpu.memory_space<vmem>>, vector<128x128xf32>
    %115 = arith.addf %113, %114 : vector<128x128xf32>
    %cst_76 = arith.constant 0.000000e+00 : f32
    %116 = vector.broadcast %cst_76 : f32 to vector<128x128xf32>
    %117 = arith.maximumf %115, %116 : vector<128x128xf32>
    %c0_77 = arith.constant 0 : index
    %c0_78 = arith.constant 0 : index
    %118 = vector.load %arg11[%c0_77, %c0_78] : memref<128x128xf32, #tpu.memory_space<vmem>>, vector<128x128xf32>
    tpu.vector_store %arg11[%c0_77, %c0_78], %117 {strides = array<i32>} : memref<128x128xf32, #tpu.memory_space<vmem>>, vector<128x128xf32>,
    %c4_i32 = arith.constant 4 : i32
    %119 = arith.index_cast %c4_i32 : i32 to index
    %c0_79 = arith.constant 0 : index
    %c0_80 = arith.constant 0 : index
    %120 = vector.load %arg4[%119, %c0_79, %c0_80] : memref<6x128x128xbf16, #tpu.memory_space<vmem>>, vector<1x128x128xbf16>
    %121 = vector.shape_cast %120 : vector<1x128x128xbf16> to vector<128x128xbf16>
    %122 = arith.index_cast %c4_i32 : i32 to index
    %c0_81 = arith.constant 0 : index
    %c0_82 = arith.constant 0 : index
    %123 = vector.load %arg6[%122, %c0_81, %c0_82] : memref<6x128x128xbf16, #tpu.memory_space<vmem>>, vector<1x128x128xbf16>
    %124 = vector.shape_cast %123 : vector<1x128x128xbf16> to vector<128x128xbf16>
    %125 = arith.index_cast %c4_i32 : i32 to index
    %c0_83 = arith.constant 0 : index
    %c0_84 = arith.constant 0 : index
    %126 = vector.load %arg5[%125, %c0_83, %c0_84] : memref<6x1x128xf32, #tpu.memory_space<vmem>>, vector<1x1x128xf32>
    %127 = vector.shape_cast %126 : vector<1x1x128xf32> to vector<1x128xf32>
    %128 = arith.index_cast %c4_i32 : i32 to index
    %c0_85 = arith.constant 0 : index
    %c0_86 = arith.constant 0 : index
    %129 = vector.load %arg7[%128, %c0_85, %c0_86] : memref<6x1x128xf32, #tpu.memory_space<vmem>>, vector<1x1x128xf32>
    %130 = vector.shape_cast %129 : vector<1x1x128xf32> to vector<1x128xf32>
    %c0_87 = arith.constant 0 : index
    %c0_88 = arith.constant 0 : index
    %131 = vector.load %arg11[%c0_87, %c0_88] : memref<128x128xf32, #tpu.memory_space<vmem>>, vector<128x128xf32>
    %132 = arith.truncf %131 : vector<128x128xf32> to vector<128x128xbf16>
    %cst_89 = arith.constant dense<0.000000e+00> : vector<128x128xf32>
    %133 = tpu.matmul %132, %121, %cst_89 {dimension_numbers = #tpu.dot_dimension_numbers<[1], [0], [0], [1], [0, 0, 1, 1], [], []>} : vector<128x128xbf16>, vector<128x128xbf16>, vector<128x128xf32> -> vector<128x128xf32>
    %134 = vector.broadcast %127 : vector<1x128xf32> to vector<128x128xf32>
    %135 = arith.addf %133, %134 : vector<128x128xf32>
    %cst_90 = arith.constant 0.000000e+00 : f32
    %136 = vector.broadcast %cst_90 : f32 to vector<128x128xf32>
    %137 = arith.maximumf %135, %136 : vector<128x128xf32>
    %138 = arith.truncf %137 : vector<128x128xf32> to vector<128x128xbf16>
    %cst_91 = arith.constant dense<0.000000e+00> : vector<128x128xf32>
    %139 = tpu.matmul %138, %124, %cst_91 {dimension_numbers = #tpu.dot_dimension_numbers<[1], [0], [0], [1], [0, 0, 1, 1], [], []>} : vector<128x128xbf16>, vector<128x128xbf16>, vector<128x128xf32> -> vector<128x128xf32>
    %140 = vector.broadcast %130 : vector<1x128xf32> to vector<128x128xf32>
    %141 = arith.addf %139, %140 : vector<128x128xf32>
    %c0_92 = arith.constant 0 : index
    %c0_93 = arith.constant 0 : index
    %142 = vector.load %arg11[%c0_92, %c0_93] : memref<128x128xf32, #tpu.memory_space<vmem>>, vector<128x128xf32>
    %143 = arith.addf %141, %142 : vector<128x128xf32>
    %cst_94 = arith.constant 0.000000e+00 : f32
    %144 = vector.broadcast %cst_94 : f32 to vector<128x128xf32>
    %145 = arith.maximumf %143, %144 : vector<128x128xf32>
    %c0_95 = arith.constant 0 : index
    %c0_96 = arith.constant 0 : index
    %146 = vector.load %arg11[%c0_95, %c0_96] : memref<128x128xf32, #tpu.memory_space<vmem>>, vector<128x128xf32>
    tpu.vector_store %arg11[%c0_95, %c0_96], %145 {strides = array<i32>} : memref<128x128xf32, #tpu.memory_space<vmem>>, vector<128x128xf32>,
    %c5_i32 = arith.constant 5 : i32
    %147 = arith.index_cast %c5_i32 : i32 to index
    %c0_97 = arith.constant 0 : index
    %c0_98 = arith.constant 0 : index
    %148 = vector.load %arg4[%147, %c0_97, %c0_98] : memref<6x128x128xbf16, #tpu.memory_space<vmem>>, vector<1x128x128xbf16>
    %149 = vector.shape_cast %148 : vector<1x128x128xbf16> to vector<128x128xbf16>
    %150 = arith.index_cast %c5_i32 : i32 to index
    %c0_99 = arith.constant 0 : index
    %c0_100 = arith.constant 0 : index
    %151 = vector.load %arg6[%150, %c0_99, %c0_100] : memref<6x128x128xbf16, #tpu.memory_space<vmem>>, vector<1x128x128xbf16>
    %152 = vector.shape_cast %151 : vector<1x128x128xbf16> to vector<128x128xbf16>
    %153 = arith.index_cast %c5_i32 : i32 to index
    %c0_101 = arith.constant 0 : index
    %c0_102 = arith.constant 0 : index
    %154 = vector.load %arg5[%153, %c0_101, %c0_102] : memref<6x1x128xf32, #tpu.memory_space<vmem>>, vector<1x1x128xf32>
    %155 = vector.shape_cast %154 : vector<1x1x128xf32> to vector<1x128xf32>
    %156 = arith.index_cast %c5_i32 : i32 to index
    %c0_103 = arith.constant 0 : index
    %c0_104 = arith.constant 0 : index
    %157 = vector.load %arg7[%156, %c0_103, %c0_104] : memref<6x1x128xf32, #tpu.memory_space<vmem>>, vector<1x1x128xf32>
    %158 = vector.shape_cast %157 : vector<1x1x128xf32> to vector<1x128xf32>
    %c0_105 = arith.constant 0 : index
    %c0_106 = arith.constant 0 : index
    %159 = vector.load %arg11[%c0_105, %c0_106] : memref<128x128xf32, #tpu.memory_space<vmem>>, vector<128x128xf32>
    %160 = arith.truncf %159 : vector<128x128xf32> to vector<128x128xbf16>
    %cst_107 = arith.constant dense<0.000000e+00> : vector<128x128xf32>
    %161 = tpu.matmul %160, %149, %cst_107 {dimension_numbers = #tpu.dot_dimension_numbers<[1], [0], [0], [1], [0, 0, 1, 1], [], []>} : vector<128x128xbf16>, vector<128x128xbf16>, vector<128x128xf32> -> vector<128x128xf32>
    %162 = vector.broadcast %155 : vector<1x128xf32> to vector<128x128xf32>
    %163 = arith.addf %161, %162 : vector<128x128xf32>
    %cst_108 = arith.constant 0.000000e+00 : f32
    %164 = vector.broadcast %cst_108 : f32 to vector<128x128xf32>
    %165 = arith.maximumf %163, %164 : vector<128x128xf32>
    %166 = arith.truncf %165 : vector<128x128xf32> to vector<128x128xbf16>
    %cst_109 = arith.constant dense<0.000000e+00> : vector<128x128xf32>
    %167 = tpu.matmul %166, %152, %cst_109 {dimension_numbers = #tpu.dot_dimension_numbers<[1], [0], [0], [1], [0, 0, 1, 1], [], []>} : vector<128x128xbf16>, vector<128x128xbf16>, vector<128x128xf32> -> vector<128x128xf32>
    %168 = vector.broadcast %158 : vector<1x128xf32> to vector<128x128xf32>
    %169 = arith.addf %167, %168 : vector<128x128xf32>
    %c0_110 = arith.constant 0 : index
    %c0_111 = arith.constant 0 : index
    %170 = vector.load %arg11[%c0_110, %c0_111] : memref<128x128xf32, #tpu.memory_space<vmem>>, vector<128x128xf32>
    %171 = arith.addf %169, %170 : vector<128x128xf32>
    %cst_112 = arith.constant 0.000000e+00 : f32
    %172 = vector.broadcast %cst_112 : f32 to vector<128x128xf32>
    %173 = arith.maximumf %171, %172 : vector<128x128xf32>
    %c0_113 = arith.constant 0 : index
    %c0_114 = arith.constant 0 : index
    %174 = vector.load %arg11[%c0_113, %c0_114] : memref<128x128xf32, #tpu.memory_space<vmem>>, vector<128x128xf32>
    tpu.vector_store %arg11[%c0_113, %c0_114], %173 {strides = array<i32>} : memref<128x128xf32, #tpu.memory_space<vmem>>, vector<128x128xf32>,
    %c6_i32 = arith.constant 6 : i32
    %c0_115 = arith.constant 0 : index
    %c0_116 = arith.constant 0 : index
    %175 = vector.load %arg11[%c0_115, %c0_116] : memref<128x128xf32, #tpu.memory_space<vmem>>, vector<128x128xf32>
    %176 = arith.truncf %175 : vector<128x128xf32> to vector<128x128xbf16>
    %c0_117 = arith.constant 0 : index
    %c0_118 = arith.constant 0 : index
    %177 = vector.load %arg8[%c0_117, %c0_118] : memref<128x128xbf16, #tpu.memory_space<vmem>>, vector<128x128xbf16>
    %cst_119 = arith.constant dense<0.000000e+00> : vector<128x128xf32>
    %178 = tpu.matmul %176, %177, %cst_119 {dimension_numbers = #tpu.dot_dimension_numbers<[1], [0], [0], [1], [0, 0, 1, 1], [], []>} : vector<128x128xbf16>, vector<128x128xbf16>, vector<128x128xf32> -> vector<128x128xf32>
    %c0_120 = arith.constant 0 : index
    %c0_121 = arith.constant 0 : index
    %179 = vector.load %arg9[%c0_120, %c0_121] : memref<1x128xf32, #tpu.memory_space<vmem>>, vector<1x128xf32>
    %180 = vector.broadcast %179 : vector<1x128xf32> to vector<128x128xf32>
    %181 = arith.addf %178, %180 : vector<128x128xf32>
    %c0_122 = arith.constant 0 : index
    %c0_123 = arith.constant 0 : index
    %182 = vector.load %arg10[%c0_122, %c0_123] : memref<128x128xf32, #tpu.memory_space<vmem>>, vector<128x128xf32>
    tpu.vector_store %arg10[%c0_122, %c0_123], %181 {strides = array<i32>} : memref<128x128xf32, #tpu.memory_space<vmem>>, vector<128x128xf32>,
    return
  }
  func.func @transform_0(%arg0: i32) -> (i32, i32) {
    %c0_i32 = arith.constant 0 : i32
    %c0_i32_0 = arith.constant 0 : i32
    return %arg0, %c0_i32 : i32, i32
  }
  func.func @transform_1(%arg0: i32) -> (i32, i32) {
    %c0_i32 = arith.constant 0 : i32
    %c0_i32_0 = arith.constant 0 : i32
    %c0_i32_1 = arith.constant 0 : i32
    return %c0_i32, %c0_i32_0 : i32, i32
  }
  func.func @transform_2(%arg0: i32) -> (i32, i32) {
    %c0_i32 = arith.constant 0 : i32
    %c0_i32_0 = arith.constant 0 : i32
    %c0_i32_1 = arith.constant 0 : i32
    return %c0_i32, %c0_i32_0 : i32, i32
  }
  func.func @transform_3(%arg0: i32) -> (i32, i32, i32) {
    %c0_i32 = arith.constant 0 : i32
    %c0_i32_0 = arith.constant 0 : i32
    %c0_i32_1 = arith.constant 0 : i32
    %c0_i32_2 = arith.constant 0 : i32
    return %c0_i32, %c0_i32_0, %c0_i32_1 : i32, i32, i32
  }
  func.func @transform_4(%arg0: i32) -> (i32, i32, i32) {
    %c0_i32 = arith.constant 0 : i32
    %c0_i32_0 = arith.constant 0 : i32
    %c0_i32_1 = arith.constant 0 : i32
    %c0_i32_2 = arith.constant 0 : i32
    return %c0_i32, %c0_i32_0, %c0_i32_1 : i32, i32, i32
  }
  func.func @transform_5(%arg0: i32) -> (i32, i32, i32) {
    %c0_i32 = arith.constant 0 : i32
    %c0_i32_0 = arith.constant 0 : i32
    %c0_i32_1 = arith.constant 0 : i32
    %c0_i32_2 = arith.constant 0 : i32
    return %c0_i32, %c0_i32_0, %c0_i32_1 : i32, i32, i32
  }
  func.func @transform_6(%arg0: i32) -> (i32, i32, i32) {
    %c0_i32 = arith.constant 0 : i32
    %c0_i32_0 = arith.constant 0 : i32
    %c0_i32_1 = arith.constant 0 : i32
    %c0_i32_2 = arith.constant 0 : i32
    return %c0_i32, %c0_i32_0, %c0_i32_1 : i32, i32, i32
  }
  func.func @transform_7(%arg0: i32) -> (i32, i32) {
    %c0_i32 = arith.constant 0 : i32
    %c0_i32_0 = arith.constant 0 : i32
    %c0_i32_1 = arith.constant 0 : i32
    return %c0_i32, %c0_i32_0 : i32, i32
  }
  func.func @transform_8(%arg0: i32) -> (i32, i32) {
    %c0_i32 = arith.constant 0 : i32
    %c0_i32_0 = arith.constant 0 : i32
    %c0_i32_1 = arith.constant 0 : i32
    return %c0_i32, %c0_i32_0 : i32, i32
  }
  func.func @transform_9(%arg0: i32) -> (i32, i32) {
    %c0_i32 = arith.constant 0 : i32
    %c0_i32_0 = arith.constant 0 : i32
    return %arg0, %c0_i32 : i32, i32
  }
}

</mosaic_0001>

<bundles_post_ra>
// kernel: tpu_custom_call.1
= control target key start
LH: loop header
LB: loop body
LE: loop exit
PB: predicated region body
PF: predicated region fallthrough
CT: control target
= control target key end

     0   :  { %s6021_s0 = inlined_call_operand.hbm [shape: bf16[256,128], index: 0, kind: input, shape index: {}]   ;;  %s6022_s1 = inlined_call_operand.hbm [shape: bf16[128,128], index: 1, kind: input, shape index: {}]   ;;  %s6023_s2 = inlined_call_operand.vmem [shape: f32[1,128], index: 2, kind: input, shape index: {}]   ;;  %s6024_s3 = inlined_call_operand.hbm [shape: bf16[6,128,128], index: 3, kind: input, shape index: {}]   ;;  %s6025_s4 = inlined_call_operand.vmem [shape: f32[6,1,128], index: 4, kind: input, shape index: {}]   ;;  %s6026_s5 = inlined_call_operand.hbm [shape: bf16[6,128,128], index: 5, kind: input, shape index: {}]   ;;  %s6027_s6 = inlined_call_operand.hbm [shape: f32[6,1,128], index: 6, kind: input, shape index: {}]   ;;  %s6028_s7 = inlined_call_operand.hbm [shape: bf16[128,128], index: 7, kind: input, shape index: {}]   ;;  %s6029_s8 = inlined_call_operand.vmem [shape: f32[1,128], index: 8, kind: input, shape index: {}]   ;;  %s6030_s9 = inlined_call_operand.hbm [shape: f32[256,128], index: 9, kind: output, shape index: {}]  }
   0x1   :  { %6037 = sst [smem:[#allocation20_spill]] %s6022_s1 }
   0x2   :  { %6038 = sst [smem:[#allocation21_spill]] %s6024_s3 }
   0x3   :  { %6039 = sst [smem:[#allocation22_spill]] %s6026_s5 }
   0x4   :  { %14 = vsyncpa [#allocation4], 0 }
   0x5   :  { %16 = vsyncpa [#allocation4 + $0x1], 0 }
   0x6   :  { %17 = vsyncpa [#allocation7], 0 }
   0x7   :  { %18 = vsyncpa [#allocation10], 0 }
   0x8   :  { %19 = vsyncpa [#allocation13], 0 }
   0x9   :  { %20 = vsyncpa [#allocation5], 0 }
   0xa   :  { %22 = vsyncpa [#allocation5 + $0x1], 0  ;;  %s4989_s30 = smov 0   ;;  %s4991_s10 = smov 0  }
   0xb   :  { %s4993_s11 = smov 0   ;;  %s4995_s12 = smov 0  }
   0xc LB: > { %s4926_s13 = smov [#allocation6]   ;;  %s5010_s15 = sadd.s32 4294967295, %s4924_s12   ;;  %s4924_s12 = sphi %s4995_s12, %s6066_s12   ;;  %s4920_s11 = sphi %s4993_s11, %s6065_s11   ;;  %s4916_s10 = sphi %s4991_s10, %s6064_s10   ;;  %s4912_s30 = sphi %s4989_s30, %s6063_s30  }
   0xd   : > { %s265_s14 = sshll.u32 %s4926_s13, 4  ;;  %p3631_p0 = scmp.ge.s32.totalorder %s4924_s12, 1  ;;  %s266_s14 = int_to_ptr.vmem [resolvable:$true] %s265_s14 }
   0xe   : > { %p6033_p1 = scmp.eq.s32.totalorder %s5010_s15, 0  ;;  %p253_p2 = scmp.lt.s32.totalorder %s4924_s12, 3 }
   0xf   : > { %s4927_s17 = smov [#allocation9]   ;;  %s4928_s20 = smov [#allocation8]  }
  0x10   : > { %p5015_p3 = pnand %p3631_p0, %p253_p2  ;;  %s297_s18 = sshll.u32 %s4927_s17, 4  ;;  %s5028_s18 = int_to_ptr.vmem [resolvable:$true] %s297_s18 }
  0x11   : > { %s281_s21 = sshll.u32 %s4928_s20, 4  ;;  %s4701_s23 = scalar_lea.vmem %s266_s14, 1024  ;;  %s5030_s21 = int_to_ptr.vmem [resolvable:$true] %s281_s21 }
  0x12   : > { %s6040_s16 = scalar_select %p5015_p3, 1, 0 }
  0x13   : > { %p4491_p5 = pneg %p5015_p3  ;;  %p4702_p8 = scmp.ne.s32.totalorder %s266_s14, %s4701_s23 }
  0x14   : > { %p4709_p11 = scmp.lt.s32.totalorder %s266_s14, %s266_s14  ;;  %p4710_p12 = scmp.lt.s32.totalorder %s4701_s23, %s4701_s23 }
  0x15   : > { %p5024_p6 = pnand %p4491_p5, %p6033_p1 }
  0x16   : > { %p4711_p13 = por %p4710_p12, %p4709_p11 }
  0x17   : > { %p5034_p7 = pneg %p5024_p6 }
  0x19   : > { %p4704_p9 = pnand %p4702_p8, %p5034_p7 }
  0x1b   : > { %p4705_p10 = pneg %p4704_p9 }
  0x1d   : > { %p4712_p0 = pnand %p4711_p13, %p4705_p10 }
  0x1f   : > { %4715 = shalt.err (!%p4712_p0)
}
  0x20   : > { %s6031_s24 = smov 64   ;;  %s6032_s25 = smov 4  }
  0x21   : > { %s6043_s1 = sld [smem:[#allocation20_spill]]  ;;  %s4727_s28 = scalar_lea.vmem %s5028_s18, 6144 }
  0x22   : > { %p4728_p2 = scmp.ne.s32.totalorder %s5028_s18, %s4727_s28  ;;  %p4735_p9 = scmp.lt.s32.totalorder %s5028_s18, %s5028_s18 }
  0x23   : > { %p4736_p10 = scmp.lt.s32.totalorder %s4727_s28, %s4727_s28 }
  0x24   : > { %p4730_p5 = pnand %p4728_p2, %p5034_p7 }
  0x25   : > { %p4737_p11 = por %p4736_p10, %p4735_p9 }
  0x26   : > { %p4731_p8 = pneg %p4730_p5 }
  0x27   : > { %4494 = dma.hbm_to_vmem [thread:$0]  (!%p5024_p6), %s6043_s1, 1024, %s266_s14, [#allocation7], %s6031_s24, %s6031_s24, %s6032_s25  }
  0x28   : > { %p4738_p12 = pnand %p4737_p11, %p4731_p8 }
  0x2a   : > { %4741 = shalt.err (!%p4738_p12)
}
  0x2b   : > { %s6044_s5 = sld [smem:[#allocation22_spill]]  ;;  %s4753_s14 = scalar_lea.vmem %s5030_s21, 6144 }
  0x2c   : > { %p4754_p13 = scmp.ne.s32.totalorder %s5030_s21, %s4753_s14  ;;  %p4761_p5 = scmp.lt.s32.totalorder %s5030_s21, %s5030_s21 }
  0x2d   : > { %p4762_p8 = scmp.lt.s32.totalorder %s4753_s14, %s4753_s14 }
  0x2e   : > { %p4756_p0 = pnand %p4754_p13, %p5034_p7 }
  0x2f   : > { %p4763_p9 = por %p4762_p8, %p4761_p5 }
  0x30   : > { %p4757_p2 = pneg %p4756_p0 }
  0x31   : > { %4500 = dma.hbm_to_vmem [thread:$0]  (!%p5024_p6), %s6044_s5, 6144, %s5028_s18, [#allocation10], %s6031_s24, %s6031_s24, %s6032_s25  }
  0x32   : > { %p4764_p10 = pnand %p4763_p9, %p4757_p2 }
  0x34   : > { %4767 = shalt.err (!%p4764_p10)
}
  0x35   : > { %s6045_s3 = sld [smem:[#allocation21_spill]]  ;;  %s4931_s18 = smov [#allocation11]  }
  0x36   : > { %s310_s23 = sshll.u32 %s4931_s18, 4  ;;  %s311_s23 = int_to_ptr.vmem [resolvable:$true] %s310_s23 }
  0x37   : > { %s4779_s26 = scalar_lea.vmem %s311_s23, 96  ;;  %p4787_p0 = scmp.lt.s32.totalorder %s311_s23, %s311_s23 }
  0x38   : > { %p4780_p11 = scmp.ne.s32.totalorder %s311_s23, %s4779_s26  ;;  %p4788_p2 = scmp.lt.s32.totalorder %s4779_s26, %s4779_s26 }
  0x3a   : > { %p4782_p12 = pnand %p4780_p11, %p5034_p7  ;;  %p4789_p5 = por %p4788_p2, %p4787_p0 }
  0x3b   : > { %4497 = dma.hbm_to_vmem [thread:$0]  (!%p5024_p6), %s6045_s3, 6144, %s5030_s21, [#allocation7], %s6031_s24, %s6031_s24, %s6032_s25  }
  0x3c   : > { %p4783_p13 = pneg %p4782_p12 }
  0x3e   : > { %p4790_p8 = pnand %p4789_p5, %p4783_p13 }
  0x40   : > { %4793 = shalt.err (!%p4790_p8)
}
  0x41   : > { %s4932_s27 = smov 16   ;;  %s4933_s28 = smov 1  }
  0x42   : > { %4503 = dma.hbm_to_vmem [thread:$0]  (!%p5024_p6), %s6027_s6, 96, %s311_s23, [#allocation10], %s4932_s27, %s4932_s27, %s4933_s28  }
  0x43   : > { %s4934_s13 = smov [#allocation12]  }
  0x44   : > { %s323_s14 = sshll.u32 %s4934_s13, 4  ;;  %s324_s14 = int_to_ptr.vmem [resolvable:$true] %s323_s14 }
  0x45   : > { %s4805_s17 = scalar_lea.vmem %s324_s14, 1024  ;;  %p4813_p12 = scmp.lt.s32.totalorder %s324_s14, %s324_s14 }
  0x46   : > { %p4806_p9 = scmp.ne.s32.totalorder %s324_s14, %s4805_s17  ;;  %p4814_p13 = scmp.lt.s32.totalorder %s4805_s17, %s4805_s17 }
  0x48   : > { %p4808_p10 = pnand %p4806_p9, %p5034_p7  ;;  %p4815_p0 = por %p4814_p13, %p4813_p12 }
  0x4a   : > { %p4809_p11 = pneg %p4808_p10 }
  0x4c   : > { %p4816_p2 = pnand %p4815_p0, %p4809_p11 }
  0x4e   : > { %4819 = shalt.err (!%p4816_p2)
}
  0x4f   : > { %4506 = dma.hbm_to_vmem [thread:$0]  (!%p5024_p6), %s6028_s7, 1024, %s324_s14, [#allocation13], %s6031_s24, %s6031_s24, %s6032_s25  }
  0x50   : > { %s3630_s19 = sadd.s32 4294967294, %s4924_s12   ;;  %s5097_s22 = sadd.s32 1, %s4924_s12  }
  0x51   : > { %s35_s23 = sadd.s32 1, %s4920_s11  ;;  %s32_s26 = ssub.s32 %s4924_s12, %s5097_s22 }
  0x52   : > { %p42_p7 = scmp.ne.s32.totalorder %s4920_s11, %s4916_s10  ;;  %p33_p5 = scmp.eq.s32.totalorder %s32_s26, 0 }
  0x53   : > { %p43_p8 = scmp.eq.s32.totalorder %s4924_s12, 0  ;;  %p48_p9 = scmp.ne.s32.totalorder %s4916_s10, %s4912_s30 }
  0x54   : > { %p240_p10 = scmp.eq.s32.totalorder %s5010_s15, 1  ;;  %p246_p13 = scmp.eq.s32.totalorder %s3630_s19, 1 }
  0x55   : > { %s5109_s27 = scalar_select %p33_p5, %s4920_s11, %s35_s23  }
  0x56   : > { %p44_p11 = por %p43_p8, %p42_p7  ;;  %p5113_p12 = por %p6033_p1, %p48_p9 }
  0x57   : > { %p5117_p6 = por %p240_p10, %p42_p7  ;;  %p4520_p0 = scmp.lt.s32.totalorder %s4924_s12, 2 }
  0x58   : > { %s6046_s28 = scalar_select %p5113_p12, 1, 0 }
  0x59   : > { %s6047_s29 = scalar_select %p5117_p6, 1, 0 }
  0x5a   : > { %s340_s21 = sand.u32 1, %s4920_s11   ;;  %p5123_p2 = por %p246_p13, %p48_p9 }
  0x5b   : > { %s3638_s14 = sshll.u32 %s340_s21, 6  ;;  %s3793_s17 = sshll.u32 %s4924_s12, 10 }
  0x5c   : > { %s6048_s13 = scalar_select %p5123_p2, 1, 0 }
  0x5d   : > { %s5131_s23 = scalar_lea.hbm %s6021_s0, %s3793_s17  ;;  %s344_s26 = scalar_lea.vmem [#allocation3], %s3638_s14 }
  0x5e   : > { %s351_s24 = sshll.u32 %s344_s26, 4  ;;  %p5133_p7 = pnand %p4520_p0, %p44_p11  ;;  %s5137_s24 = int_to_ptr.vmem [resolvable:$true] %s351_s24 }
  0x5f   : > { %s5139_s25 = scalar_lea.sflag [#allocation4], %s340_s21  ;;  %s4820_s1 = scalar_lea.hbm %s5131_s23, 1024 }
  0x60   : > { %p4821_p5 = scmp.ne.s32.totalorder %s5131_s23, %s4820_s1  ;;  %p4822_p8 = pneg %p5133_p7 }
  0x61   : > { %s4825_s14 = scalar_lea.hbm %s6021_s0, 2048  ;;  %p4826_p11 = scmp.lt.s32.totalorder %s5131_s23, %s6021_s0 }
  0x62   : > { %p4823_p9 = pnand %p4822_p8, %p4821_p5  ;;  %p4827_p13 = scmp.lt.s32.totalorder %s4825_s14, %s4820_s1 }
  0x64   : > { %p4824_p10 = pneg %p4823_p9  ;;  %p4828_p0 = por %p4827_p13, %p4826_p11 }
  0x66   : > { %p4829_p4 = pnand %p4828_p0, %p4824_p10 }
  0x68   : > { %4832 = shalt.err (!%p4829_p4)
}
  0x69   : > { %s4833_s21 = scalar_lea.vmem %s5137_s24, 1024  ;;  %s4935_s3 = smov [#allocation3]  }
  0x6a   : > { %p4834_p1 = scmp.ne.s32.totalorder %s5137_s24, %s4833_s21  ;;  %s4838_s5 = sshll.u32 %s4935_s3, 4  ;;  %s4839_s5 = int_to_ptr.vmem [resolvable:$false] %s4838_s5 }
  0x6b   : > { %s4840_s17 = scalar_lea.vmem %s4839_s5, 2048  ;;  %p4841_p9 = scmp.lt.s32.totalorder %s5137_s24, %s4839_s5 }
  0x6c   : > { %p4836_p2 = pnand %p4834_p1, %p4822_p8  ;;  %p4842_p6 = scmp.lt.s32.totalorder %s4840_s17, %s4833_s21 }
  0x6e   : > { %p4837_p5 = pneg %p4836_p2  ;;  %p4843_p12 = por %p4842_p6, %p4841_p9 }
  0x70   : > { %p4844_p3 = pnand %p4843_p12, %p4837_p5 }
  0x72   : > { %4847 = shalt.err (!%p4844_p3)
}
  0x73   : > { %s6050_s1 = smov 4   ;;  %s6051_s20 = smov 64  }
  0x74   : > { %4510 = dma.hbm_to_vmem [thread:$0]  (!%p5133_p7), %s5131_s23, 1024, %s5137_s24, %s5139_s25, %s6051_s20, %s6051_s20, %s6050_s1  }
  0x75   : > { %p6052_p1 = scmp.ne.s32.totalorder %s6040_s16, 0 }
  0x76   : > { %s5166_s3 = sand.u32 (!%p6052_p1), 1, %s4916_s10   ;;  %p6053_p3 = scmp.ne.s32.totalorder (!%p6052_p1), %s6046_s28, 0 }
  0x77   : > { %363 = sbr.rel (%p6052_p1) target bundleno = 3095 (0xc17), region = 56  ;;  %s3642_s5 = sshll.u32 (!%p6052_p1), %s5166_s3, 6 }
  0x78   : > { %s366_s14 = scalar_lea.sflag (!%p6052_p1), [#allocation4], %s5166_s3  ;;  %s5170_s18 = scalar_lea.vmem (!%p6052_p1), [#allocation3], %s3642_s5 }
  0x7c   : > { %4891 = dma.done.wait (%p6053_p3), %s366_s14, 1024  }
  0x7d   : > { %4893 = vsyncadd (%p6053_p3), %s366_s14, 4294966272  ;;  %p6054_p4 = scmp.eq.s32.totalorder %s5010_s15, 0 }
  0x7f   : > { %4895 = dma.done.wait (%p6054_p4), [#allocation7], 7168   ;;  %p6055_p12 = pmov %p6054_p4 }
  0x80   : > { %p6056_p6 = pmov %p6054_p4 }
  0x81   : > { %4897 = vsyncadd (%p6055_p12), [#allocation7], 4294960128 }
  0x82   : > { %4899 = dma.done.wait (%p6056_p6), [#allocation10], 6240   ;;  %p6057_p2 = pmov %p6054_p4 }
  0x84   : > { %4901 = vsyncadd (%p6057_p2), [#allocation10], 4294961056  ;;  %p6058_p7 = pmov %p6057_p2 }
  0x85   : > { %p6059_p8 = pmov %p6057_p2 }
  0x86   : > { %4903 = dma.done.wait (%p6058_p7), [#allocation13], 1024  }
  0x87   : > { %4905 = vsyncadd (%p6059_p8), [#allocation13], 4294966272  ;;  %v4570_v0 = vld [vmem:[#allocation6 + $0x38] sm:$0xff]   ;;  %v4571_v1 = vld [vmem:[#allocation6 + $0x30] sm:$0xff]   ;;  %s3648_s16 = sshll.u32 %s5166_s3, 7  ;;  %s3794_s23 = sshll.u32 %s5010_s15, 11 }
  0x88   : > { %4019 = vmatprep.subr.bf16.mxu0 %v4570_v0  ;;  %v4572_v2 = vld [vmem:[#allocation6 + $0x28] sm:$0xff]   ;;  %v4573_v3 = vld [vmem:[#allocation6 + $0x20] sm:$0xff]   ;;  %v4574_v5 = vld [vmem:[#allocation6 + $0x18] sm:$0xff]   ;;  %s5953_s28 = scalar_lea.vmem [#allocation14], %s3648_s16  ;;  %s5974_s17 = scalar_lea.hbm %s6030_s9, %s3794_s23 }
  0x89   : > { %4020 = vmatpush3.bf16.msra.mxu0 %v4570_v0  ;;  %v4578_v4 = vld [vmem:[%s5170_s18] sm:$0xff]   ;;  %v4575_v6 = vld [vmem:[#allocation6 + $0x10] sm:$0xff]   ;;  %v4586_v7 = vld [vmem:[#allocation8 + $0x38] sm:$0xff]   ;;  %s3509_s19 = sshll.u32 %s5953_s28, 4  ;;  %s3496_s1 = scalar_lea.sflag [#allocation5], %s5166_s3  ;;  %s5976_s19 = int_to_ptr.vmem [resolvable:$true] %s3509_s19 }
  0x8a   : > { %4021 = vmatprep.subr.bf16.mxu0 %v4571_v1  ;;  %4035 = vmatprep.mubr.bf16.mxu0 %v4578_v4  ;;  %v4587_v8 = vld [vmem:[#allocation8 + $0x30] sm:$0xff]   ;;  %v4576_v9 = vld [vmem:[#allocation6 + $0x8] sm:$0xff]   ;;  %v4577_v11 = vld [vmem:[#allocation6] sm:$0xff]   ;;  %s4848_s15 = scalar_lea.vmem %s5976_s19, 2048  ;;  %p6060_p11 = scmp.ne.s32.totalorder %s6047_s29, 0 }
  0x8b   : > { %4051 = vmatprep.subr.bf16.mxu1 %v4586_v7  ;;  %v4588_v10 = vld [vmem:[#allocation8 + $0x28] sm:$0xff]   ;;  %v4589_v12 = vld [vmem:[#allocation8 + $0x20] sm:$0xff]   ;;  %v4590_v13 = vld [vmem:[#allocation8 + $0x18] sm:$0xff]   ;;  %p4849_p10 = scmp.ne.s32.totalorder %s5976_s19, %s4848_s15  ;;  %s4936_s20 = smov [#allocation14]  }
  0x8c   : > { %4052 = vmatpush3.bf16.msra.mxu1 %v4586_v7  ;;  %v4579_v14 = vld [vmem:[%s5170_s18 + $0x8] sm:$0xff]   ;;  %v4580_v15 = vld [vmem:[%s5170_s18 + $0x10] sm:$0xff]   ;;  %v4581_v16 = vld [vmem:[%s5170_s18 + $0x18] sm:$0xff]   ;;  %s4852_s5 = sshll.u32 %s4936_s20, 4  ;;  %s4853_s5 = int_to_ptr.vmem [resolvable:$false] %s4852_s5 }
  0x8d   : > { %4022 = vmatpush3.bf16.msra.mxu0 %v4571_v1  ;;  %4053 = vmatprep.subr.bf16.mxu1 %v4587_v8  ;;  %v4582_v17 = vld [vmem:[%s5170_s18 + $0x20] sm:$0xff]   ;;  %v4583_v18 = vld [vmem:[%s5170_s18 + $0x28] sm:$0xff]   ;;  %v4584_v19 = vld [vmem:[%s5170_s18 + $0x30] sm:$0xff]   ;;  %p4850_p13 = pnand %p4849_p10, %p6060_p11  ;;  %s4854_s14 = scalar_lea.vmem %s4853_s5, 4096 }
  0x8e   : > { %4023 = vmatprep.subr.bf16.mxu0 %v4572_v2  ;;  %v4585_v20 = vld [vmem:[%s5170_s18 + $0x38] sm:$0xff]   ;;  %v4591_v21 = vld [vmem:[#allocation8 + $0x10] sm:$0xff]   ;;  %v4592_v22 = vld [vmem:[#allocation8 + $0x8] sm:$0xff]   ;;  %p4855_p5 = scmp.lt.s32.totalorder %s5976_s19, %s4853_s5  ;;  %p4856_p9 = scmp.lt.s32.totalorder %s4854_s14, %s4848_s15 }
  0x8f   : > { %v4593_v23 = vld [vmem:[#allocation8] sm:$0xff]   ;;  %v4594_v24 = vld [vmem:[#allocation9 + $0x38] sm:$0xff]   ;;  %v4595_v25 = vld [vmem:[#allocation9 + $0x30] sm:$0xff]   ;;  %p4851_p0 = pneg %p4850_p13 }
  0x90   : > { %4054 = vmatpush3.bf16.msra.mxu1 %v4587_v8  ;;  %v4596_v26 = vld [vmem:[#allocation9 + $0x28] sm:$0xff]   ;;  %v4597_v27 = vld [vmem:[#allocation9 + $0x20] sm:$0xff]   ;;  %v4598_v28 = vld [vmem:[#allocation9 + $0x18] sm:$0xff]   ;;  %p4857_p1 = por %p4856_p9, %p4855_p5 }
  0x91   : > { %4024 = vmatpush3.bf16.msra.mxu0 %v4572_v2  ;;  %4055 = vmatprep.subr.bf16.mxu1 %v4588_v10  ;;  %v3649_v32 = vld [vmem:[%s6023_s2] ss:$0 sm:$0xff]  ;;  %v4600_v7 = vld [vmem:[#allocation9 + $0x8] sm:$0xff]  }
  0x92   : > { %4025 = vmatprep.subr.bf16.mxu0 %v4573_v3  ;;  %v4601_v8 = vld [vmem:[#allocation9] sm:$0xff]   ;;  %p4858_p3 = pnand %p4857_p1, %p4851_p0 }
  0x94   : > { %4056 = vmatpush3.bf16.msra.mxu1 %v4588_v10  ;;  %v4603_v10 = vld [vmem:[#allocation8 + $0x70] sm:$0xff]  }
  0x95   : > { %4026 = vmatpush3.bf16.msra.mxu0 %v4573_v3  ;;  %4057 = vmatprep.subr.bf16.mxu1 %v4589_v12 }
  0x96   : > { %4027 = vmatprep.subr.bf16.mxu0 %v4574_v5 }
  0x98   : > { %4058 = vmatpush3.bf16.msra.mxu1 %v4589_v12  ;;  %v4605_v12 = vld [vmem:[#allocation8 + $0x60] sm:$0xff]  }
  0x99   : > { %4028 = vmatpush3.bf16.msra.mxu0 %v4574_v5  ;;  %4059 = vmatprep.subr.bf16.mxu1 %v4590_v13 }
  0x9a   : > { %4029 = vmatprep.subr.bf16.mxu0 %v4575_v6 }
  0x9c   : > { %4060 = vmatpush3.bf16.msra.mxu1 %v4590_v13  ;;  %v4606_v13 = vld [vmem:[#allocation8 + $0x58] sm:$0xff]  }
  0x9d   : > { %4030 = vmatpush3.bf16.msra.mxu0 %v4575_v6  ;;  %4061 = vmatprep.subr.bf16.mxu1 %v4591_v21  ;;  %v4599_v6 = vld [vmem:[#allocation9 + $0x10] sm:$0xff]  }
  0x9e   : > { %4031 = vmatprep.subr.bf16.mxu0 %v4576_v9 }
  0xa0   : > { %4062 = vmatpush3.bf16.msra.mxu1 %v4591_v21 }
  0xa1   : > { %4032 = vmatpush3.bf16.msra.mxu0 %v4576_v9  ;;  %4063 = vmatprep.subr.bf16.mxu1 %v4592_v22  ;;  %v4602_v9 = vld [vmem:[#allocation8 + $0x78] sm:$0xff]  }
  0xa2   : > { %4033 = vmatprep.subr.bf16.mxu0 %v4577_v11 }
  0xa4   : > { %4064 = vmatpush3.bf16.msra.mxu1 %v4592_v22 }
  0xa5   : > { %4034 = vmatpush3.bf16.msra.mxu0 %v4577_v11  ;;  %4065 = vmatprep.subr.bf16.mxu1 %v4593_v23  ;;  %v4604_v11 = vld [vmem:[#allocation8 + $0x68] sm:$0xff]  }
  0xa6   : > { %4083 = vmatprep.subr.bf16.mxu0 %v4594_v24 }
  0xa8   : > { %4036 = vmatmul.mubr.bf16.vlgmr.msra.gmra.mxu0 %v4579_v14  ;;  %4066 = vmatpush3.bf16.msra.mxu1 %v4593_v23 }
  0xa9   : > { %4039 = vmatprep.mubr.bf16.mxu0 %v4580_v15  ;;  %4084 = vmatpush3.bf16.msra.mxu0 %v4594_v24 }
  0xaa   : > { %4085 = vmatprep.subr.bf16.mxu0 %v4595_v25  ;;  %4115 = vmatprep.subr.bf16.mxu1 %v4602_v9 }
  0xad   : > { %4086 = vmatpush3.bf16.msra.mxu0 %v4595_v25 }
  0xae   : > { %4087 = vmatprep.subr.bf16.mxu0 %v4596_v26 }
  0xb0   : > { %4040 = vmatmul.mubr.bf16.gmra.mxu0 %v4581_v16  ;;  %v3666_v16 = vld [vmem:[%s6025_s4] ss:$0 sm:$0xff] }
  0xb1   : > { %4043 = vmatprep.mubr.bf16.mxu0 %v4582_v17  ;;  %4088 = vmatpush3.bf16.msra.mxu0 %v4596_v26 }
  0xb2   : > { %4089 = vmatprep.subr.bf16.mxu0 %v4597_v27 }
  0xb5   : > { %4090 = vmatpush3.bf16.msra.mxu0 %v4597_v27 }
  0xb6   : > { %4091 = vmatprep.subr.bf16.mxu0 %v4598_v28 }
  0xb8   : > { %4044 = vmatmul.mubr.bf16.gmra.mxu0 %v4583_v18 }
  0xb9   : > { %4047 = vmatprep.mubr.bf16.mxu0 %v4584_v19  ;;  %4092 = vmatpush3.bf16.msra.mxu0 %v4598_v28 }
  0xba   : > { %4093 = vmatprep.subr.bf16.mxu0 %v4599_v6 }
  0xbd   : > { %4094 = vmatpush3.bf16.msra.mxu0 %v4599_v6 }
  0xbe   : > { %4095 = vmatprep.subr.bf16.mxu0 %v4600_v7 }
  0xc0   : > { %4048 = vmatmul.mubr.bf16.gmra.mxu0 %v4585_v20 }
  0xc1   : > { %4096 = vmatpush3.bf16.msra.mxu0 %v4600_v7 }
  0xc2   : > { %4097 = vmatprep.subr.bf16.mxu0 %v4601_v8 }
  0xc5   : > { %4098 = vmatpush3.bf16.msra.mxu0 %v4601_v8 }
 0x168   : > { %v4037_v29 = vpop.f32.mrf.mxu0 }
 0x169   : > { %v5205_v37 = vadd.f32 %v4037_v29, %v3649_v32 }
 0x16a   : > { %v596_v30 = vpop.f32.mrf.mxu0 }
 0x16b   : > { %v5201_v35 = vadd.f32 %v3649_v32, %v596_v30 }
 0x16c   : > { %v4038_v31 = vpop.f32.mrf.mxu0 }
 0x16d   : > { %v5199_v33 = vadd.f32 %v4038_v31, %v3649_v32 }
 0x16e   : > { %v599_v34 = vpop.f32.mrf.mxu0 }
 0x16f   : > { %v5203_v36 = vadd.f32 %v3649_v32, %v599_v34  ;;  %v726_v40 = vpack.c.bf16 %v5199_v33, %v5205_v37 }
 0x170   : > { %v4041_v38 = vpop.f32.mrf.mxu0 }
 0x171   : > { %v725_v39 = vpack.c.bf16 %v5203_v36, %v5201_v35  ;;  %v5217_v47 = vadd.f32 %v4041_v38, %v3649_v32 }
 0x172   : > { %v612_v41 = vpop.f32.mrf.mxu0 }
 0x173   : > { %4067 = vmatprep.mubr.bf16.mxu1 %v725_v39  ;;  %v5213_v45 = vadd.f32 %v3649_v32, %v612_v41 }
 0x174   : > { %v4042_v42 = vpop.f32.mrf.mxu0  ;;  %4068 = vmatmul.mubr.bf16.vlgmr.msra.gmra.mxu1 %v726_v40 }
 0x175   : > { %v5211_v43 = vadd.f32 %v4042_v42, %v3649_v32  ;;  %4116 = vmatpush3.bf16.msra.mxu1 %v4602_v9 }
 0x176   : > { %v615_v44 = vpop.f32.mrf.mxu0  ;;  %4117 = vmatprep.subr.bf16.mxu1 %v4603_v10 }
 0x177   : > { %v5215_v46 = vadd.f32 %v3649_v32, %v615_v44  ;;  %v728_v50 = vpack.c.bf16 %v5211_v43, %v5217_v47 }
 0x178   : > { %v4045_v48 = vpop.f32.mrf.mxu0 }
 0x179   : > { %v727_v49 = vpack.c.bf16 %v5215_v46, %v5213_v45  ;;  %v5229_v57 = vadd.f32 %v4045_v48, %v3649_v32  ;;  %4118 = vmatpush3.bf16.msra.mxu1 %v4603_v10 }
 0x17a   : > { %v628_v51 = vpop.f32.mrf.mxu0  ;;  %4119 = vmatprep.subr.bf16.mxu1 %v4604_v11 }
 0x17b   : > { %4071 = vmatprep.mubr.bf16.mxu1 %v727_v49  ;;  %v5225_v55 = vadd.f32 %v3649_v32, %v628_v51 }
 0x17c   : > { %v4046_v52 = vpop.f32.mrf.mxu0  ;;  %4072 = vmatmul.mubr.bf16.gmra.mxu1 %v728_v50 }
 0x17d   : > { %v5223_v53 = vadd.f32 %v4046_v52, %v3649_v32  ;;  %4120 = vmatpush3.bf16.msra.mxu1 %v4604_v11 }
 0x17e   : > { %v631_v54 = vpop.f32.mrf.mxu0  ;;  %4121 = vmatprep.subr.bf16.mxu1 %v4605_v12 }
 0x17f   : > { %v5227_v56 = vadd.f32 %v3649_v32, %v631_v54  ;;  %v730_v60 = vpack.c.bf16 %v5223_v53, %v5229_v57 }
 0x180   : > { %v4049_v58 = vpop.f32.mrf.mxu0 }
 0x181   : > { %v729_v59 = vpack.c.bf16 %v5227_v56, %v5225_v55  ;;  %v5241_v3 = vadd.f32 %v4049_v58, %v3649_v32  ;;  %4122 = vmatpush3.bf16.msra.mxu1 %v4605_v12 }
 0x182   : > { %v644_v61 = vpop.f32.mrf.mxu0  ;;  %4123 = vmatprep.subr.bf16.mxu1 %v4606_v13 }
 0x183   : > { %4075 = vmatprep.mubr.bf16.mxu1 %v729_v59  ;;  %v5237_v1 = vadd.f32 %v3649_v32, %v644_v61 }
 0x184   : > { %v4050_v62 = vpop.f32.mrf.mxu0  ;;  %4076 = vmatmul.mubr.bf16.gmra.mxu1 %v730_v60 }
 0x185   : > { %v5235_v63 = vadd.f32 %v4050_v62, %v3649_v32  ;;  %4124 = vmatpush3.bf16.msra.mxu1 %v4606_v13 }
 0x186   : > { %v647_v0 = vpop.f32.mrf.mxu0 }
 0x187   : > { %v5239_v2 = vadd.f32 %v3649_v32, %v647_v0  ;;  %v732_v5 = vpack.c.bf16 %v5235_v63, %v5241_v3 }
 0x189   : > { %v731_v4 = vpack.c.bf16 %v5239_v2, %v5237_v1 }
 0x18b   : > { %4079 = vmatprep.mubr.bf16.mxu1 %v731_v4 }
 0x18c   : > { %4080 = vmatmul.mubr.bf16.gmra.mxu1 %v732_v5 }
 0x234   : > { %v4069_v14 = vpop.f32.mrf.mxu1 }
 0x235   : > { %v830_v20 = vadd.f32 %v4069_v14, %v3666_v16 }
 0x236   : > { %v821_v15 = vpop.f32.mrf.mxu1 }
 0x237   : > { %v822_v18 = vadd.f32 %v3666_v16, %v821_v15  ;;  %v886_v27 = vmax.f32 %v830_v20, 0.0 }
 0x238   : > { %v4070_v17 = vpop.f32.mrf.mxu1 }
 0x239   : > { %v833_v19 = vadd.f32 %v4070_v17, %v3666_v16  ;;  %v884_v25 = vmax.f32 %v822_v18, 0.0 }
 0x23a   : > { %v824_v21 = vpop.f32.mrf.mxu1 }
 0x23b   : > { %v825_v22 = vadd.f32 %v3666_v16, %v824_v21  ;;  %v887_v23 = vmax.f32 %v833_v19, 0.0 }
 0x23c   : > { %v4073_v24 = vpop.f32.mrf.mxu1 }
 0x23d   : > { %v885_v26 = vmax.f32 %v825_v22, 0.0  ;;  %v901_v30 = vpack.c.bf16 %v887_v23, %v886_v27  ;;  %v846_v38 = vadd.f32 %v4073_v24, %v3666_v16  ;;  %v4607_v24 = vld [vmem:[#allocation8 + $0x50] sm:$0xff]   ;;  %v4610_v27 = vld [vmem:[#allocation9 + $0x78] sm:$0xff]  }
 0x23e   : > { %v837_v28 = vpop.f32.mrf.mxu1  ;;  %4125 = vmatprep.subr.bf16.mxu1 %v4607_v24  ;;  %4147 = vmatprep.subr.bf16.mxu0 %v4610_v27 }
 0x23f   : > { %v900_v29 = vpack.c.bf16 %v885_v26, %v884_v25  ;;  %v838_v32 = vadd.f32 %v3666_v16, %v837_v28  ;;  %v890_v49 = vmax.f32 %v846_v38, 0.0  ;;  %4126 = vmatpush3.bf16.msra.mxu1 %v4607_v24  ;;  %v4608_v25 = vld [vmem:[#allocation8 + $0x48] sm:$0xff]   ;;  %v4609_v26 = vld [vmem:[#allocation8 + $0x40] sm:$0xff]   ;;  %v4611_v28 = vld [vmem:[#allocation9 + $0x70] sm:$0xff]  }
 0x240   : > { %v4074_v31 = vpop.f32.mrf.mxu1  ;;  %4127 = vmatprep.subr.bf16.mxu1 %v4608_v25 }
 0x241   : > { %v849_v34 = vadd.f32 %v4074_v31, %v3666_v16  ;;  %4099 = vmatprep.mubr.bf16.mxu0 %v900_v29  ;;  %v888_v44 = vmax.f32 %v838_v32, 0.0  ;;  %v4613_v29 = vld [vmem:[#allocation9 + $0x60] sm:$0xff]  }
 0x242   : > { %v840_v39 = vpop.f32.mrf.mxu1  ;;  %4100 = vmatmul.mubr.bf16.vlgmr.msra.gmra.mxu0 %v901_v30  ;;  %v4614_v30 = vld [vmem:[#allocation9 + $0x58] sm:$0xff]   ;;  %v5250_v32 = vld [vmem:[#allocation11] ss:$0 sm:$0xff] }
 0x243   : > { %v841_v40 = vadd.f32 %v3666_v16, %v840_v39  ;;  %v891_v41 = vmax.f32 %v849_v34, 0.0  ;;  %4128 = vmatpush3.bf16.msra.mxu1 %v4608_v25  ;;  %4148 = vmatpush3.bf16.msra.mxu0 %v4610_v27 }
 0x244   : > { %v4077_v42 = vpop.f32.mrf.mxu1  ;;  %4129 = vmatprep.subr.bf16.mxu1 %v4609_v26  ;;  %4149 = vmatprep.subr.bf16.mxu0 %v4611_v28 }
 0x245   : > { %v889_v48 = vmax.f32 %v841_v40, 0.0  ;;  %v903_v52 = vpack.c.bf16 %v891_v41, %v890_v49  ;;  %v862_v60 = vadd.f32 %v4077_v42, %v3666_v16 }
 0x246   : > { %v853_v50 = vpop.f32.mrf.mxu1 }
 0x247   : > { %v902_v51 = vpack.c.bf16 %v889_v48, %v888_v44  ;;  %v854_v58 = vadd.f32 %v3666_v16, %v853_v50  ;;  %v894_v7 = vmax.f32 %v862_v60, 0.0  ;;  %4130 = vmatpush3.bf16.msra.mxu1 %v4609_v26  ;;  %4150 = vmatpush3.bf16.msra.mxu0 %v4611_v28 }
 0x248   : > { %v4078_v54 = vpop.f32.mrf.mxu1 }
 0x249   : > { %v865_v59 = vadd.f32 %v4078_v54, %v3666_v16  ;;  %4103 = vmatprep.mubr.bf16.mxu0 %v902_v51  ;;  %v892_v5 = vmax.f32 %v854_v58, 0.0 }
 0x24a   : > { %v856_v61 = vpop.f32.mrf.mxu1  ;;  %4104 = vmatmul.mubr.bf16.gmra.mxu0 %v903_v52 }
 0x24b   : > { %v857_v62 = vadd.f32 %v3666_v16, %v856_v61  ;;  %v895_v0 = vmax.f32 %v865_v59, 0.0 }
 0x24c   : > { %v4081_v4 = vpop.f32.mrf.mxu1 }
 0x24d   : > { %v893_v6 = vmax.f32 %v857_v62, 0.0  ;;  %v905_v10 = vpack.c.bf16 %v895_v0, %v894_v7  ;;  %v878_v14 = vadd.f32 %v4081_v4, %v3666_v16 }
 0x24e   : > { %v869_v8 = vpop.f32.mrf.mxu1 }
 0x24f   : > { %v904_v9 = vpack.c.bf16 %v893_v6, %v892_v5  ;;  %v870_v12 = vadd.f32 %v3666_v16, %v869_v8  ;;  %v898_v21 = vmax.f32 %v878_v14, 0.0 }
 0x250   : > { %v4082_v11 = vpop.f32.mrf.mxu1 }
 0x251   : > { %v881_v13 = vadd.f32 %v4082_v11, %v3666_v16  ;;  %4107 = vmatprep.mubr.bf16.mxu0 %v904_v9  ;;  %v896_v19 = vmax.f32 %v870_v12, 0.0 }
 0x252   : > { %v872_v15 = vpop.f32.mrf.mxu1  ;;  %4108 = vmatmul.mubr.bf16.gmra.mxu0 %v905_v10 }
 0x253   : > { %v873_v17 = vadd.f32 %v3666_v16, %v872_v15  ;;  %v899_v18 = vmax.f32 %v881_v13, 0.0  ;;  %v4612_v16 = vld [vmem:[#allocation9 + $0x68] sm:$0xff]  }
 0x254   : > { %4151 = vmatprep.subr.bf16.mxu0 %v4612_v16 }
 0x255   : > { %v897_v20 = vmax.f32 %v873_v17, 0.0  ;;  %v907_v23 = vpack.c.bf16 %v899_v18, %v898_v21  ;;  %4152 = vmatpush3.bf16.msra.mxu0 %v4612_v16 }
 0x256   : > { %4153 = vmatprep.subr.bf16.mxu0 %v4613_v29 }
 0x257   : > { %v906_v22 = vpack.c.bf16 %v897_v20, %v896_v19 }
 0x259   : > { %4111 = vmatprep.mubr.bf16.mxu0 %v906_v22  ;;  %4154 = vmatpush3.bf16.msra.mxu0 %v4613_v29 }
 0x25a   : > { %4112 = vmatmul.mubr.bf16.gmra.mxu0 %v907_v23  ;;  %4155 = vmatprep.subr.bf16.mxu0 %v4614_v30 }
 0x25d   : > { %4156 = vmatpush3.bf16.msra.mxu0 %v4614_v30 }
 0x302   : > { %v4101_v31 = vpop.f32.mrf.mxu0 }
 0x303   : > { %v1005_v39 = vadd.f32 %v4101_v31, %v5250_v32 }
 0x304   : > { %v996_v34 = vpop.f32.mrf.mxu0 }
 0x305   : > { %v997_v38 = vadd.f32 %v5250_v32, %v996_v34  ;;  %v5263_v50 = vadd.f32 %v1005_v39, %v5205_v37 }
 0x306   : > { %v4102_v40 = vpop.f32.mrf.mxu0 }
 0x307   : > { %v1008_v41 = vadd.f32 %v4102_v40, %v5250_v32  ;;  %v5256_v44 = vadd.f32 %v997_v38, %v5201_v35 }
 0x308   : > { %v999_v42 = vpop.f32.mrf.mxu0 }
 0x309   : > { %v5259_v48 = vadd.f32 %v1008_v41, %v5199_v33  ;;  %v1000_v49 = vadd.f32 %v5250_v32, %v999_v42  ;;  %v1075_v59 = vmax.f32 %v5256_v44, 0.0  ;;  %v1077_v33 = vmax.f32 %v5263_v50, 0.0 }
 0x30a   : > { %v4105_v51 = vpop.f32.mrf.mxu0 }
 0x30b   : > { %v5266_v52 = vadd.f32 %v1000_v49, %v5203_v36  ;;  %v1078_v54 = vmax.f32 %v5259_v48, 0.0  ;;  %v1021_v61 = vadd.f32 %v4105_v51, %v5250_v32 }
 0x30c   : > { %v1012_v58 = vpop.f32.mrf.mxu0 }
 0x30d   : > { %v1076_v35 = vmax.f32 %v5266_v52, 0.0  ;;  %v1013_v60 = vadd.f32 %v5250_v32, %v1012_v58  ;;  %v1162_v0 = vpack.c.bf16 %v1078_v54, %v1077_v33  ;;  %v5291_v8 = vadd.f32 %v1021_v61, %v5217_v47  ;;  %v4618_v61 = vld [vmem:[#allocation8 + $0xb8] sm:$0xff]  }
 0x30e   : > { %v4106_v62 = vpop.f32.mrf.mxu0  ;;  %4179 = vmatprep.subr.bf16.mxu1 %v4618_v61 }
 0x30f   : > { %v1024_v37 = vadd.f32 %v4106_v62, %v5250_v32  ;;  %v1161_v36 = vpack.c.bf16 %v1076_v35, %v1075_v59  ;;  %v5284_v5 = vadd.f32 %v1013_v60, %v5213_v45  ;;  %v1081_v14 = vmax.f32 %v5291_v8, 0.0  ;;  %v4617_v60 = vld [vmem:[#allocation9 + $0x40] sm:$0xff]   ;;  %v4619_v62 = vld [vmem:[#allocation8 + $0xb0] sm:$0xff]  }
 0x310   : > { %v1015_v4 = vpop.f32.mrf.mxu0 }
 0x311   : > { %v5287_v6 = vadd.f32 %v1024_v37, %v5211_v43  ;;  %v1016_v7 = vadd.f32 %v5250_v32, %v1015_v4  ;;  %4131 = vmatprep.mubr.bf16.mxu1 %v1161_v36  ;;  %v1079_v45 = vmax.f32 %v5284_v5, 0.0  ;;  %v4620_v37 = vld [vmem:[#allocation8 + $0xa8] sm:$0xff]   ;;  %v4621_v36 = vld [vmem:[#allocation8 + $0xa0] sm:$0xff]  }
 0x312   : > { %v4109_v9 = vpop.f32.mrf.mxu0  ;;  %4132 = vmatmul.mubr.bf16.vlgmr.msra.gmra.mxu1 %v1162_v0  ;;  %v4622_v0 = vld [vmem:[#allocation8 + $0x98] sm:$0xff]  }
 0x313   : > { %v5294_v10 = vadd.f32 %v1016_v7, %v5215_v46  ;;  %v1082_v11 = vmax.f32 %v5287_v6, 0.0  ;;  %v1037_v15 = vadd.f32 %v4109_v9, %v5250_v32  ;;  %4180 = vmatpush3.bf16.msra.mxu1 %v4618_v61  ;;  %v3685_v9 = vld [vmem:[%s6025_s4 + $0x1] ss:$0 sm:$0xff] }
 0x314   : > { %v1028_v12 = vpop.f32.mrf.mxu0  ;;  %4181 = vmatprep.subr.bf16.mxu1 %v4619_v62 }
 0x315   : > { %v1080_v13 = vmax.f32 %v5294_v10, 0.0  ;;  %v1029_v43 = vadd.f32 %v5250_v32, %v1028_v12  ;;  %v1164_v19 = vpack.c.bf16 %v1082_v11, %v1081_v14  ;;  %v5319_v23 = vadd.f32 %v1037_v15, %v5229_v57 }
 0x316   : > { %v4110_v47 = vpop.f32.mrf.mxu0 }
 0x317   : > { %v1040_v17 = vadd.f32 %v4110_v47, %v5250_v32  ;;  %v1163_v46 = vpack.c.bf16 %v1080_v13, %v1079_v45  ;;  %v5312_v20 = vadd.f32 %v1029_v43, %v5225_v55  ;;  %v1085_v16 = vmax.f32 %v5319_v23, 0.0  ;;  %4182 = vmatpush3.bf16.msra.mxu1 %v4619_v62 }
 0x318   : > { %v1031_v18 = vpop.f32.mrf.mxu0  ;;  %4183 = vmatprep.subr.bf16.mxu1 %v4620_v37 }
 0x319   : > { %v5315_v21 = vadd.f32 %v1040_v17, %v5223_v53  ;;  %v1032_v22 = vadd.f32 %v5250_v32, %v1031_v18  ;;  %4135 = vmatprep.mubr.bf16.mxu1 %v1163_v46  ;;  %v1083_v55 = vmax.f32 %v5312_v20, 0.0 }
 0x31a   : > { %v4113_v24 = vpop.f32.mrf.mxu0  ;;  %4136 = vmatmul.mubr.bf16.gmra.mxu1 %v1164_v19 }
 0x31b   : > { %v5322_v25 = vadd.f32 %v1032_v22, %v5227_v56  ;;  %v1086_v26 = vmax.f32 %v5315_v21, 0.0  ;;  %v1053_v29 = vadd.f32 %v4113_v24, %v5250_v32  ;;  %4184 = vmatpush3.bf16.msra.mxu1 %v4620_v37 }
 0x31c   : > { %v1044_v27 = vpop.f32.mrf.mxu0  ;;  %4185 = vmatprep.subr.bf16.mxu1 %v4621_v36 }
 0x31d   : > { %v1084_v28 = vmax.f32 %v5322_v25, 0.0  ;;  %v1045_v53 = vadd.f32 %v5250_v32, %v1044_v27  ;;  %v1166_v34 = vpack.c.bf16 %v1086_v26, %v1085_v16  ;;  %v5347_v41 = vadd.f32 %v1053_v29, %v5241_v3 }
 0x31e   : > { %v4114_v57 = vpop.f32.mrf.mxu0 }
 0x31f   : > { %v1056_v30 = vadd.f32 %v4114_v57, %v5250_v32  ;;  %v1165_v56 = vpack.c.bf16 %v1084_v28, %v1083_v55  ;;  %v5340_v38 = vadd.f32 %v1045_v53, %v5237_v1  ;;  %v1089_v58 = vmax.f32 %v5347_v41, 0.0  ;;  %4186 = vmatpush3.bf16.msra.mxu1 %v4621_v36 }
 0x320   : > { %v1047_v31 = vpop.f32.mrf.mxu0  ;;  %4187 = vmatprep.subr.bf16.mxu1 %v4622_v0 }
 0x321   : > { %v5343_v39 = vadd.f32 %v1056_v30, %v5235_v63  ;;  %v1048_v40 = vadd.f32 %v5250_v32, %v1047_v31  ;;  %4139 = vmatprep.mubr.bf16.mxu1 %v1165_v56  ;;  %v1087_v51 = vmax.f32 %v5340_v38, 0.0  ;;  %v4616_v32 = vld [vmem:[#allocation9 + $0x48] sm:$0xff]  }
 0x322   : > { %4140 = vmatmul.mubr.bf16.gmra.mxu1 %v1166_v34 }
 0x323   : > { %v5350_v42 = vadd.f32 %v1048_v40, %v5239_v2  ;;  %v1090_v49 = vmax.f32 %v5343_v39, 0.0  ;;  %v4615_v2 = vld [vmem:[#allocation9 + $0x50] sm:$0xff]   ;;  %4188 = vmatpush3.bf16.msra.mxu1 %v4622_v0 }
 0x324   : > { %4157 = vmatprep.subr.bf16.mxu0 %v4615_v2 }
 0x325   : > { %v1088_v1 = vmax.f32 %v5350_v42, 0.0  ;;  %v1168_v3 = vpack.c.bf16 %v1090_v49, %v1089_v58  ;;  %4158 = vmatpush3.bf16.msra.mxu0 %v4615_v2 }
 0x326   : > { %4159 = vmatprep.subr.bf16.mxu0 %v4616_v32 }
 0x327   : > { %v1167_v63 = vpack.c.bf16 %v1088_v1, %v1087_v51 }
 0x329   : > { %4143 = vmatprep.mubr.bf16.mxu1 %v1167_v63  ;;  %4160 = vmatpush3.bf16.msra.mxu0 %v4616_v32 }
 0x32a   : > { %4144 = vmatmul.mubr.bf16.gmra.mxu1 %v1168_v3  ;;  %4161 = vmatprep.subr.bf16.mxu0 %v4617_v60 }
 0x32d   : > { %4162 = vmatpush3.bf16.msra.mxu0 %v4617_v60 }
 0x3d2   : > { %v4133_v4 = vpop.f32.mrf.mxu1 }
 0x3d3   : > { %v1266_v47 = vadd.f32 %v4133_v4, %v3685_v9 }
 0x3d4   : > { %v1257_v7 = vpop.f32.mrf.mxu1 }
 0x3d5   : > { %v1258_v43 = vadd.f32 %v3685_v9, %v1257_v7  ;;  %v1322_v27 = vmax.f32 %v1266_v47, 0.0 }
 0x3d6   : > { %v4134_v12 = vpop.f32.mrf.mxu1 }
 0x3d7   : > { %v1269_v15 = vadd.f32 %v4134_v12, %v3685_v9  ;;  %v1320_v22 = vmax.f32 %v1258_v43, 0.0 }
 0x3d8   : > { %v1260_v17 = vpop.f32.mrf.mxu1 }
 0x3d9   : > { %v1261_v46 = vadd.f32 %v3685_v9, %v1260_v17  ;;  %v1323_v18 = vmax.f32 %v1269_v15, 0.0 }
 0x3da   : > { %v4137_v19 = vpop.f32.mrf.mxu1 }
 0x3db   : > { %v1321_v24 = vmax.f32 %v1261_v46, 0.0  ;;  %v1337_v57 = vpack.c.bf16 %v1323_v18, %v1322_v27  ;;  %v1282_v34 = vadd.f32 %v4137_v19, %v3685_v9 }
 0x3dc   : > { %v1273_v53 = vpop.f32.mrf.mxu1 }
 0x3dd   : > { %v1336_v29 = vpack.c.bf16 %v1321_v24, %v1320_v22  ;;  %v1274_v56 = vadd.f32 %v3685_v9, %v1273_v53  ;;  %v1326_v61 = vmax.f32 %v1282_v34, 0.0 }
 0x3de   : > { %v4138_v30 = vpop.f32.mrf.mxu1 }
 0x3df   : > { %v1285_v31 = vadd.f32 %v4138_v30, %v3685_v9  ;;  %4163 = vmatprep.mubr.bf16.mxu0 %v1336_v29  ;;  %v1324_v32 = vmax.f32 %v1274_v56, 0.0 }
 0x3e0   : > { %v1276_v40 = vpop.f32.mrf.mxu1  ;;  %4164 = vmatmul.mubr.bf16.vlgmr.msra.gmra.mxu0 %v1337_v57 }
 0x3e1   : > { %v1277_v63 = vadd.f32 %v3685_v9, %v1276_v40  ;;  %v1327_v3 = vmax.f32 %v1285_v31, 0.0 }
 0x3e2   : > { %v4141_v2 = vpop.f32.mrf.mxu1 }
 0x3e3   : > { %v1325_v60 = vmax.f32 %v1277_v63, 0.0  ;;  %v1339_v36 = vpack.c.bf16 %v1327_v3, %v1326_v61  ;;  %v1298_v12 = vadd.f32 %v4141_v2, %v3685_v9  ;;  %v4624_v61 = vld [vmem:[#allocation8 + $0x88] sm:$0xff]  }
 0x3e4   : > { %v1289_v62 = vpop.f32.mrf.mxu1 }
 0x3e5   : > { %v1338_v37 = vpack.c.bf16 %v1325_v60, %v1324_v32  ;;  %v1290_v4 = vadd.f32 %v3685_v9, %v1289_v62  ;;  %v1330_v19 = vmax.f32 %v1298_v12, 0.0  ;;  %v4623_v60 = vld [vmem:[#allocation8 + $0x90] sm:$0xff]   ;;  %v4625_v62 = vld [vmem:[#allocation8 + $0x80] sm:$0xff]  }
 0x3e6   : > { %v4142_v0 = vpop.f32.mrf.mxu1  ;;  %4189 = vmatprep.subr.bf16.mxu1 %v4623_v60  ;;  %v5367_v12 = vld [vmem:[#allocation11 + $0x1] ss:$0 sm:$0xff] }
 0x3e7   : > { %v1301_v7 = vadd.f32 %v4142_v0, %v3685_v9  ;;  %4167 = vmatprep.mubr.bf16.mxu0 %v1338_v37  ;;  %v1328_v46 = vmax.f32 %v1290_v4, 0.0  ;;  %4190 = vmatpush3.bf16.msra.mxu1 %v4623_v60  ;;  %v4626_v37 = vld [vmem:[#allocation9 + $0xb8] sm:$0xff]   ;;  %v4629_v0 = vld [vmem:[#allocation9 + $0xa0] sm:$0xff]  }
 0x3e8   : > { %v1292_v43 = vpop.f32.mrf.mxu1  ;;  %4168 = vmatmul.mubr.bf16.gmra.mxu0 %v1339_v36  ;;  %4191 = vmatprep.subr.bf16.mxu1 %v4624_v61  ;;  %v4627_v36 = vld [vmem:[#allocation9 + $0xb0] sm:$0xff]   ;;  %v4630_v4 = vld [vmem:[#allocation9 + $0x98] sm:$0xff]  }
 0x3e9   : > { %v1293_v15 = vadd.f32 %v3685_v9, %v1292_v43  ;;  %v1331_v47 = vmax.f32 %v1301_v7, 0.0  ;;  %4211 = vmatprep.subr.bf16.mxu0 %v4626_v37 }
 0x3ea   : > { %v4145_v17 = vpop.f32.mrf.mxu1  ;;  %4212 = vmatpush3.bf16.msra.mxu0 %v4626_v37 }
 0x3eb   : > { %v1329_v18 = vmax.f32 %v1293_v15, 0.0  ;;  %v1341_v27 = vpack.c.bf16 %v1331_v47, %v1330_v19  ;;  %v1314_v30 = vadd.f32 %v4145_v17, %v3685_v9  ;;  %4192 = vmatpush3.bf16.msra.mxu1 %v4624_v61  ;;  %4213 = vmatprep.subr.bf16.mxu0 %v4627_v36 }
 0x3ec   : > { %v1305_v22 = vpop.f32.mrf.mxu1  ;;  %4193 = vmatprep.subr.bf16.mxu1 %v4625_v62 }
 0x3ed   : > { %v1340_v24 = vpack.c.bf16 %v1329_v18, %v1328_v46  ;;  %v1306_v29 = vadd.f32 %v3685_v9, %v1305_v22  ;;  %v1334_v3 = vmax.f32 %v1314_v30, 0.0 }
 0x3ee   : > { %v4146_v53 = vpop.f32.mrf.mxu1  ;;  %4214 = vmatpush3.bf16.msra.mxu0 %v4627_v36 }
 0x3ef   : > { %v1317_v57 = vadd.f32 %v4146_v53, %v3685_v9  ;;  %4171 = vmatprep.mubr.bf16.mxu0 %v1340_v24  ;;  %v1332_v40 = vmax.f32 %v1306_v29, 0.0  ;;  %4194 = vmatpush3.bf16.msra.mxu1 %v4625_v62 }
 0x3f0   : > { %v1308_v56 = vpop.f32.mrf.mxu1  ;;  %4172 = vmatmul.mubr.bf16.gmra.mxu0 %v1341_v27 }
 0x3f1   : > { %v1309_v31 = vadd.f32 %v3685_v9, %v1308_v56  ;;  %v1335_v34 = vmax.f32 %v1317_v57, 0.0  ;;  %v4628_v9 = vld [vmem:[#allocation9 + $0xa8] sm:$0xff]  }
 0x3f2   : > { %4215 = vmatprep.subr.bf16.mxu0 %v4628_v9 }
 0x3f3   : > { %v1333_v63 = vmax.f32 %v1309_v31, 0.0  ;;  %v1343_v32 = vpack.c.bf16 %v1335_v34, %v1334_v3  ;;  %4216 = vmatpush3.bf16.msra.mxu0 %v4628_v9 }
 0x3f4   : > { %4217 = vmatprep.subr.bf16.mxu0 %v4629_v0 }
 0x3f5   : > { %v1342_v2 = vpack.c.bf16 %v1333_v63, %v1332_v40 }
 0x3f7   : > { %4175 = vmatprep.mubr.bf16.mxu0 %v1342_v2  ;;  %4218 = vmatpush3.bf16.msra.mxu0 %v4629_v0 }
 0x3f8   : > { %4176 = vmatmul.mubr.bf16.gmra.mxu0 %v1343_v32  ;;  %4219 = vmatprep.subr.bf16.mxu0 %v4630_v4 }
 0x3fb   : > { %4220 = vmatpush3.bf16.msra.mxu0 %v4630_v4 }
 0x4a0   : > { %v4165_v7 = vpop.f32.mrf.mxu0 }
 0x4a1   : > { %v1441_v47 = vadd.f32 %v4165_v7, %v5367_v12 }
 0x4a2   : > { %v1432_v43 = vpop.f32.mrf.mxu0 }
 0x4a3   : > { %v1433_v15 = vadd.f32 %v5367_v12, %v1432_v43  ;;  %v5383_v27 = vadd.f32 %v1441_v47, %v1077_v33 }
 0x4a4   : > { %v4166_v17 = vpop.f32.mrf.mxu0 }
 0x4a5   : > { %v1444_v46 = vadd.f32 %v4166_v17, %v5367_v12  ;;  %v5374_v19 = vadd.f32 %v1433_v15, %v1075_v59  ;;  %v1513_v30 = vmax.f32 %v5383_v27, 0.0 }
 0x4a6   : > { %v1435_v18 = vpop.f32.mrf.mxu0 }
 0x4a7   : > { %v5378_v22 = vadd.f32 %v1444_v46, %v1078_v54  ;;  %v1436_v24 = vadd.f32 %v5367_v12, %v1435_v18  ;;  %v1511_v59 = vmax.f32 %v5374_v19, 0.0 }
 0x4a8   : > { %v4169_v53 = vpop.f32.mrf.mxu0 }
 0x4a9   : > { %v5387_v29 = vadd.f32 %v1436_v24, %v1076_v35  ;;  %v1514_v57 = vmax.f32 %v5378_v22, 0.0  ;;  %v1457_v50 = vadd.f32 %v4169_v53, %v5367_v12 }
 0x4aa   : > { %v1448_v44 = vpop.f32.mrf.mxu0 }
 0x4ab   : > { %v1512_v48 = vmax.f32 %v5387_v29, 0.0  ;;  %v1449_v54 = vadd.f32 %v5367_v12, %v1448_v44  ;;  %v1598_v35 = vpack.c.bf16 %v1514_v57, %v1513_v30  ;;  %v5415_v3 = vadd.f32 %v1457_v50, %v1081_v14  ;;  %v4634_v50 = vld [vmem:[#allocation8 + $0xf8] sm:$0xff]  }
 0x4ac   : > { %v4170_v33 = vpop.f32.mrf.mxu0  ;;  %4243 = vmatprep.subr.bf16.mxu1 %v4634_v50 }
 0x4ad   : > { %v1460_v56 = vadd.f32 %v4170_v33, %v5367_v12  ;;  %v1597_v52 = vpack.c.bf16 %v1512_v48, %v1511_v59  ;;  %v5406_v34 = vadd.f32 %v1449_v54, %v1079_v45  ;;  %v1517_v61 = vmax.f32 %v5415_v3, 0.0  ;;  %v4635_v33 = vld [vmem:[#allocation8 + $0xf0] sm:$0xff]  }
 0x4ae   : > { %v1451_v31 = vpop.f32.mrf.mxu0 }
 0x4af   : > { %v5410_v40 = vadd.f32 %v1460_v56, %v1082_v11  ;;  %v1452_v63 = vadd.f32 %v5367_v12, %v1451_v31  ;;  %4195 = vmatprep.mubr.bf16.mxu1 %v1597_v52  ;;  %v1515_v6 = vmax.f32 %v5406_v34, 0.0  ;;  %v4636_v56 = vld [vmem:[#allocation8 + $0xe8] sm:$0xff]   ;;  %v4637_v52 = vld [vmem:[#allocation8 + $0xe0] sm:$0xff]  }
 0x4b0   : > { %v4173_v2 = vpop.f32.mrf.mxu0  ;;  %4196 = vmatmul.mubr.bf16.vlgmr.msra.gmra.mxu1 %v1598_v35  ;;  %v4638_v35 = vld [vmem:[#allocation8 + $0xd8] sm:$0xff]  }
 0x4b1   : > { %v5419_v32 = vadd.f32 %v1452_v63, %v1080_v13  ;;  %v1518_v5 = vmax.f32 %v5410_v40, 0.0  ;;  %v1473_v8 = vadd.f32 %v4173_v2, %v5367_v12  ;;  %4244 = vmatpush3.bf16.msra.mxu1 %v4634_v50  ;;  %v3704_v2 = vld [vmem:[%s6025_s4 + $0x2] ss:$0 sm:$0xff] }
 0x4b2   : > { %v1464_v45 = vpop.f32.mrf.mxu0  ;;  %4245 = vmatprep.subr.bf16.mxu1 %v4635_v33 }
 0x4b3   : > { %v1516_v11 = vmax.f32 %v5419_v32, 0.0  ;;  %v1465_v60 = vadd.f32 %v5367_v12, %v1464_v45  ;;  %v1600_v37 = vpack.c.bf16 %v1518_v5, %v1517_v61  ;;  %v5447_v4 = vadd.f32 %v1473_v8, %v1085_v16 }
 0x4b4   : > { %v4174_v14 = vpop.f32.mrf.mxu0 }
 0x4b5   : > { %v1476_v62 = vadd.f32 %v4174_v14, %v5367_v12  ;;  %v1599_v10 = vpack.c.bf16 %v1516_v11, %v1515_v6  ;;  %v5438_v36 = vadd.f32 %v1465_v60, %v1083_v55  ;;  %v1521_v47 = vmax.f32 %v5447_v4, 0.0  ;;  %4246 = vmatpush3.bf16.msra.mxu1 %v4635_v33 }
 0x4b6   : > { %v1467_v13 = vpop.f32.mrf.mxu0  ;;  %4247 = vmatprep.subr.bf16.mxu1 %v4636_v56 }
 0x4b7   : > { %v5442_v9 = vadd.f32 %v1476_v62, %v1086_v26  ;;  %v1468_v0 = vadd.f32 %v5367_v12, %v1467_v13  ;;  %4199 = vmatprep.mubr.bf16.mxu1 %v1599_v10  ;;  %v1519_v21 = vmax.f32 %v5438_v36, 0.0 }
 0x4b8   : > { %v4177_v7 = vpop.f32.mrf.mxu0  ;;  %4200 = vmatmul.mubr.bf16.gmra.mxu1 %v1600_v37 }
 0x4b9   : > { %v5451_v43 = vadd.f32 %v1468_v0, %v1084_v28  ;;  %v1522_v20 = vmax.f32 %v5442_v9, 0.0  ;;  %v1489_v23 = vadd.f32 %v4177_v7, %v5367_v12  ;;  %4248 = vmatpush3.bf16.msra.mxu1 %v4636_v56 }
 0x4ba   : > { %v1480_v55 = vpop.f32.mrf.mxu0  ;;  %4249 = vmatprep.subr.bf16.mxu1 %v4637_v52 }
 0x4bb   : > { %v1520_v26 = vmax.f32 %v5451_v43, 0.0  ;;  %v1481_v15 = vadd.f32 %v5367_v12, %v1480_v55  ;;  %v1602_v46 = vpack.c.bf16 %v1522_v20, %v1521_v47  ;;  %v5479_v44 = vadd.f32 %v1489_v23, %v1089_v58  ;;  %v4632_v58 = vld [vmem:[#allocation9 + $0x88] sm:$0xff]  }
 0x4bc   : > { %v4178_v16 = vpop.f32.mrf.mxu0 }
 0x4bd   : > { %v1492_v17 = vadd.f32 %v4178_v16, %v5367_v12  ;;  %v1601_v25 = vpack.c.bf16 %v1520_v26, %v1519_v21  ;;  %v5470_v18 = vadd.f32 %v1481_v15, %v1087_v51  ;;  %4250 = vmatpush3.bf16.msra.mxu1 %v4637_v52 }
 0x4be   : > { %v1483_v28 = vpop.f32.mrf.mxu0  ;;  %4251 = vmatprep.subr.bf16.mxu1 %v4638_v35 }
 0x4bf   : > { %v5474_v24 = vadd.f32 %v1492_v17, %v1090_v49  ;;  %v1484_v53 = vadd.f32 %v5367_v12, %v1483_v28  ;;  %4203 = vmatprep.mubr.bf16.mxu1 %v1601_v25  ;;  %v1523_v51 = vmax.f32 %v5470_v18, 0.0  ;;  %v1525_v49 = vmax.f32 %v5479_v44, 0.0  ;;  %v4633_v12 = vld [vmem:[#allocation9 + $0x80] sm:$0xff]  }
 0x4c0   : > { %4204 = vmatmul.mubr.bf16.gmra.mxu1 %v1602_v46 }
 0x4c1   : > { %v5483_v54 = vadd.f32 %v1484_v53, %v1088_v1  ;;  %v1526_v38 = vmax.f32 %v5474_v24, 0.0  ;;  %v4631_v1 = vld [vmem:[#allocation9 + $0x90] sm:$0xff]   ;;  %4252 = vmatpush3.bf16.msra.mxu1 %v4638_v35 }
 0x4c2   : > { %4221 = vmatprep.subr.bf16.mxu0 %v4631_v1 }
 0x4c3   : > { %v1524_v39 = vmax.f32 %v5483_v54, 0.0  ;;  %v1604_v42 = vpack.c.bf16 %v1526_v38, %v1525_v49  ;;  %4222 = vmatpush3.bf16.msra.mxu0 %v4631_v1 }
 0x4c4   : > { %4223 = vmatprep.subr.bf16.mxu0 %v4632_v58 }
 0x4c5   : > { %v1603_v41 = vpack.c.bf16 %v1524_v39, %v1523_v51 }
 0x4c7   : > { %4207 = vmatprep.mubr.bf16.mxu1 %v1603_v41  ;;  %4224 = vmatpush3.bf16.msra.mxu0 %v4632_v58 }
 0x4c8   : > { %4208 = vmatmul.mubr.bf16.gmra.mxu1 %v1604_v42  ;;  %4225 = vmatprep.subr.bf16.mxu0 %v4633_v12 }
 0x4cb   : > { %4226 = vmatpush3.bf16.msra.mxu0 %v4633_v12 }
 0x570   : > { %v4197_v31 = vpop.f32.mrf.mxu1 }
 0x571   : > { %v1702_v14 = vadd.f32 %v4197_v31, %v3704_v2 }
 0x572   : > { %v1693_v63 = vpop.f32.mrf.mxu1 }
 0x573   : > { %v1694_v60 = vadd.f32 %v3704_v2, %v1693_v63  ;;  %v1758_v55 = vmax.f32 %v1702_v14, 0.0 }
 0x574   : > { %v4198_v45 = vpop.f32.mrf.mxu1 }
 0x575   : > { %v1705_v8 = vadd.f32 %v4198_v45, %v3704_v2  ;;  %v1756_v0 = vmax.f32 %v1694_v60, 0.0 }
 0x576   : > { %v1696_v62 = vpop.f32.mrf.mxu1 }
 0x577   : > { %v1697_v10 = vadd.f32 %v3704_v2, %v1696_v62  ;;  %v1759_v13 = vmax.f32 %v1705_v8, 0.0 }
 0x578   : > { %v4201_v37 = vpop.f32.mrf.mxu1 }
 0x579   : > { %v1757_v7 = vmax.f32 %v1697_v10, 0.0  ;;  %v1773_v16 = vpack.c.bf16 %v1759_v13, %v1758_v55  ;;  %v1718_v46 = vadd.f32 %v4201_v37, %v3704_v2 }
 0x57a   : > { %v1709_v15 = vpop.f32.mrf.mxu1 }
 0x57b   : > { %v1772_v23 = vpack.c.bf16 %v1757_v7, %v1756_v0  ;;  %v1710_v25 = vadd.f32 %v3704_v2, %v1709_v15  ;;  %v1762_v50 = vmax.f32 %v1718_v46, 0.0 }
 0x57c   : > { %v4202_v17 = vpop.f32.mrf.mxu1 }
 0x57d   : > { %v1721_v28 = vadd.f32 %v4202_v17, %v3704_v2  ;;  %4227 = vmatprep.mubr.bf16.mxu0 %v1772_v23  ;;  %v1760_v58 = vmax.f32 %v1710_v25, 0.0 }
 0x57e   : > { %v1712_v53 = vpop.f32.mrf.mxu1  ;;  %4228 = vmatmul.mubr.bf16.vlgmr.msra.gmra.mxu0 %v1773_v16 }
 0x57f   : > { %v1713_v41 = vadd.f32 %v3704_v2, %v1712_v53  ;;  %v1763_v42 = vmax.f32 %v1721_v28, 0.0 }
 0x580   : > { %v4205_v1 = vpop.f32.mrf.mxu1 }
 0x581   : > { %v1761_v12 = vmax.f32 %v1713_v41, 0.0  ;;  %v1775_v52 = vpack.c.bf16 %v1763_v42, %v1762_v50  ;;  %v1734_v45 = vadd.f32 %v4205_v1, %v3704_v2  ;;  %v4640_v50 = vld [vmem:[#allocation8 + $0xc8] sm:$0xff]  }
 0x582   : > { %v1725_v33 = vpop.f32.mrf.mxu1 }
 0x583   : > { %v1774_v56 = vpack.c.bf16 %v1761_v12, %v1760_v58  ;;  %v1726_v31 = vadd.f32 %v3704_v2, %v1725_v33  ;;  %v1766_v37 = vmax.f32 %v1734_v45, 0.0  ;;  %v4639_v12 = vld [vmem:[#allocation8 + $0xd0] sm:$0xff]   ;;  %v4641_v33 = vld [vmem:[#allocation8 + $0xc0] sm:$0xff]  }
 0x584   : > { %v4206_v35 = vpop.f32.mrf.mxu1  ;;  %4253 = vmatprep.subr.bf16.mxu1 %v4639_v12  ;;  %v5500_v45 = vld [vmem:[#allocation11 + $0x2] ss:$0 sm:$0xff] }
 0x585   : > { %v1737_v63 = vadd.f32 %v4206_v35, %v3704_v2  ;;  %4231 = vmatprep.mubr.bf16.mxu0 %v1774_v56  ;;  %v1764_v10 = vmax.f32 %v1726_v31, 0.0  ;;  %4254 = vmatpush3.bf16.msra.mxu1 %v4639_v12  ;;  %v4642_v56 = vld [vmem:[#allocation9 + $0xf8] sm:$0xff]   ;;  %v4645_v35 = vld [vmem:[#allocation9 + $0xe0] sm:$0xff]  }
 0x586   : > { %v1728_v60 = vpop.f32.mrf.mxu1  ;;  %4232 = vmatmul.mubr.bf16.gmra.mxu0 %v1775_v52  ;;  %4255 = vmatprep.subr.bf16.mxu1 %v4640_v50  ;;  %v4643_v52 = vld [vmem:[#allocation9 + $0xf0] sm:$0xff]   ;;  %v4646_v31 = vld [vmem:[#allocation9 + $0xd8] sm:$0xff]  }
 0x587   : > { %v1729_v8 = vadd.f32 %v3704_v2, %v1728_v60  ;;  %v1767_v14 = vmax.f32 %v1737_v63, 0.0  ;;  %4275 = vmatprep.subr.bf16.mxu0 %v4642_v56 }
 0x588   : > { %v4209_v62 = vpop.f32.mrf.mxu1  ;;  %4276 = vmatpush3.bf16.msra.mxu0 %v4642_v56 }
 0x589   : > { %v1765_v13 = vmax.f32 %v1729_v8, 0.0  ;;  %v1777_v55 = vpack.c.bf16 %v1767_v14, %v1766_v37  ;;  %v1750_v17 = vadd.f32 %v4209_v62, %v3704_v2  ;;  %4256 = vmatpush3.bf16.msra.mxu1 %v4640_v50  ;;  %4277 = vmatprep.subr.bf16.mxu0 %v4643_v52 }
 0x58a   : > { %v1741_v0 = vpop.f32.mrf.mxu1  ;;  %4257 = vmatprep.subr.bf16.mxu1 %v4641_v33 }
 0x58b   : > { %v1776_v7 = vpack.c.bf16 %v1765_v13, %v1764_v10  ;;  %v1742_v23 = vadd.f32 %v3704_v2, %v1741_v0  ;;  %v1770_v42 = vmax.f32 %v1750_v17, 0.0 }
 0x58c   : > { %v4210_v15 = vpop.f32.mrf.mxu1  ;;  %4278 = vmatpush3.bf16.msra.mxu0 %v4643_v52 }
 0x58d   : > { %v1753_v16 = vadd.f32 %v4210_v15, %v3704_v2  ;;  %4235 = vmatprep.mubr.bf16.mxu0 %v1776_v7  ;;  %v1768_v53 = vmax.f32 %v1742_v23, 0.0  ;;  %4258 = vmatpush3.bf16.msra.mxu1 %v4641_v33 }
 0x58e   : > { %v1744_v25 = vpop.f32.mrf.mxu1  ;;  %4236 = vmatmul.mubr.bf16.gmra.mxu0 %v1777_v55 }
 0x58f   : > { %v1745_v28 = vadd.f32 %v3704_v2, %v1744_v25  ;;  %v1771_v46 = vmax.f32 %v1753_v16, 0.0  ;;  %v4644_v2 = vld [vmem:[#allocation9 + $0xe8] sm:$0xff]  }
 0x590   : > { %4279 = vmatprep.subr.bf16.mxu0 %v4644_v2 }
 0x591   : > { %v1769_v41 = vmax.f32 %v1745_v28, 0.0  ;;  %v1779_v58 = vpack.c.bf16 %v1771_v46, %v1770_v42  ;;  %4280 = vmatpush3.bf16.msra.mxu0 %v4644_v2 }
 0x592   : > { %4281 = vmatprep.subr.bf16.mxu0 %v4645_v35 }
 0x593   : > { %v1778_v1 = vpack.c.bf16 %v1769_v41, %v1768_v53 }
 0x595   : > { %4239 = vmatprep.mubr.bf16.mxu0 %v1778_v1  ;;  %4282 = vmatpush3.bf16.msra.mxu0 %v4645_v35 }
 0x596   : > { %4240 = vmatmul.mubr.bf16.gmra.mxu0 %v1779_v58  ;;  %4283 = vmatprep.subr.bf16.mxu0 %v4646_v31 }
 0x599   : > { %4284 = vmatpush3.bf16.msra.mxu0 %v4646_v31 }
 0x63e   : > { %v4229_v63 = vpop.f32.mrf.mxu0 }
 0x63f   : > { %v1877_v14 = vadd.f32 %v4229_v63, %v5500_v45 }
 0x640   : > { %v1868_v60 = vpop.f32.mrf.mxu0 }
 0x641   : > { %v1869_v8 = vadd.f32 %v5500_v45, %v1868_v60  ;;  %v5516_v55 = vadd.f32 %v1877_v14, %v1513_v30 }
 0x642   : > { %v4230_v62 = vpop.f32.mrf.mxu0 }
 0x643   : > { %v1880_v10 = vadd.f32 %v4230_v62, %v5500_v45  ;;  %v5507_v37 = vadd.f32 %v1869_v8, %v1511_v59  ;;  %v1949_v17 = vmax.f32 %v5516_v55, 0.0 }
 0x644   : > { %v1871_v13 = vpop.f32.mrf.mxu0 }
 0x645   : > { %v5511_v0 = vadd.f32 %v1880_v10, %v1514_v57  ;;  %v1872_v7 = vadd.f32 %v5500_v45, %v1871_v13  ;;  %v1947_v59 = vmax.f32 %v5507_v37, 0.0 }
 0x646   : > { %v4233_v15 = vpop.f32.mrf.mxu0 }
 0x647   : > { %v5520_v23 = vadd.f32 %v1872_v7, %v1512_v48  ;;  %v1950_v16 = vmax.f32 %v5511_v0, 0.0  ;;  %v1893_v27 = vadd.f32 %v4233_v15, %v5500_v45 }
 0x648   : > { %v1884_v19 = vpop.f32.mrf.mxu0 }
 0x649   : > { %v1948_v22 = vmax.f32 %v5520_v23, 0.0  ;;  %v1885_v57 = vadd.f32 %v5500_v45, %v1884_v19  ;;  %v2034_v48 = vpack.c.bf16 %v1950_v16, %v1949_v17  ;;  %v5548_v42 = vadd.f32 %v1893_v27, %v1517_v61  ;;  %v4650_v27 = vld [vmem:[#allocation8 + $0x138] sm:$0xff]  }
 0x64a   : > { %v4234_v30 = vpop.f32.mrf.mxu0  ;;  %4307 = vmatprep.subr.bf16.mxu1 %v4650_v27 }
 0x64b   : > { %v1896_v25 = vadd.f32 %v4234_v30, %v5500_v45  ;;  %v2033_v29 = vpack.c.bf16 %v1948_v22, %v1947_v59  ;;  %v5539_v46 = vadd.f32 %v1885_v57, %v1515_v6  ;;  %v1953_v50 = vmax.f32 %v5548_v42, 0.0  ;;  %v4651_v30 = vld [vmem:[#allocation8 + $0x130] sm:$0xff]  }
 0x64c   : > { %v1887_v28 = vpop.f32.mrf.mxu0 }
 0x64d   : > { %v5543_v53 = vadd.f32 %v1896_v25, %v1518_v5  ;;  %v1888_v41 = vadd.f32 %v5500_v45, %v1887_v28  ;;  %4259 = vmatprep.mubr.bf16.mxu1 %v2033_v29  ;;  %v1951_v40 = vmax.f32 %v5539_v46, 0.0  ;;  %v4652_v25 = vld [vmem:[#allocation8 + $0x128] sm:$0xff]   ;;  %v4653_v29 = vld [vmem:[#allocation8 + $0x120] sm:$0xff]  }
 0x64e   : > { %v4237_v1 = vpop.f32.mrf.mxu0  ;;  %4260 = vmatmul.mubr.bf16.vlgmr.msra.gmra.mxu1 %v2034_v48  ;;  %v4654_v48 = vld [vmem:[#allocation8 + $0x118] sm:$0xff]  }
 0x64f   : > { %v5552_v58 = vadd.f32 %v1888_v41, %v1516_v11  ;;  %v1954_v34 = vmax.f32 %v5543_v53, 0.0  ;;  %v1909_v3 = vadd.f32 %v4237_v1, %v5500_v45  ;;  %4308 = vmatpush3.bf16.msra.mxu1 %v4650_v27  ;;  %v3723_v1 = vld [vmem:[%s6025_s4 + $0x3] ss:$0 sm:$0xff] }
 0x650   : > { %v1900_v6 = vpop.f32.mrf.mxu0  ;;  %4309 = vmatprep.subr.bf16.mxu1 %v4651_v30 }
 0x651   : > { %v1952_v5 = vmax.f32 %v5552_v58, 0.0  ;;  %v1901_v12 = vadd.f32 %v5500_v45, %v1900_v6  ;;  %v2036_v56 = vpack.c.bf16 %v1954_v34, %v1953_v50  ;;  %v5580_v31 = vadd.f32 %v1909_v3, %v1521_v47 }
 0x652   : > { %v4238_v61 = vpop.f32.mrf.mxu0 }
 0x653   : > { %v1912_v33 = vadd.f32 %v4238_v61, %v5500_v45  ;;  %v2035_v32 = vpack.c.bf16 %v1952_v5, %v1951_v40  ;;  %v5571_v52 = vadd.f32 %v1901_v12, %v1519_v21  ;;  %v1957_v14 = vmax.f32 %v5580_v31, 0.0  ;;  %4310 = vmatpush3.bf16.msra.mxu1 %v4651_v30 }
 0x654   : > { %v1903_v11 = vpop.f32.mrf.mxu0  ;;  %4311 = vmatprep.subr.bf16.mxu1 %v4652_v25 }
 0x655   : > { %v5575_v2 = vadd.f32 %v1912_v33, %v1522_v20  ;;  %v1904_v35 = vadd.f32 %v5500_v45, %v1903_v11  ;;  %4263 = vmatprep.mubr.bf16.mxu1 %v2035_v32  ;;  %v1955_v9 = vmax.f32 %v5571_v52, 0.0 }
 0x656   : > { %v4241_v63 = vpop.f32.mrf.mxu0  ;;  %4264 = vmatmul.mubr.bf16.gmra.mxu1 %v2036_v56 }
 0x657   : > { %v5584_v60 = vadd.f32 %v1904_v35, %v1520_v26  ;;  %v1958_v36 = vmax.f32 %v5575_v2, 0.0  ;;  %v1925_v4 = vadd.f32 %v4241_v63, %v5500_v45  ;;  %4312 = vmatpush3.bf16.msra.mxu1 %v4652_v25 }
 0x658   : > { %v1916_v21 = vpop.f32.mrf.mxu0  ;;  %4313 = vmatprep.subr.bf16.mxu1 %v4653_v29 }
 0x659   : > { %v1956_v20 = vmax.f32 %v5584_v60, 0.0  ;;  %v1917_v8 = vadd.f32 %v5500_v45, %v1916_v21  ;;  %v2038_v10 = vpack.c.bf16 %v1958_v36, %v1957_v14  ;;  %v5612_v19 = vadd.f32 %v1925_v4, %v1525_v49  ;;  %v4648_v49 = vld [vmem:[#allocation9 + $0xc8] sm:$0xff]  }
 0x65a   : > { %v4242_v47 = vpop.f32.mrf.mxu0 }
 0x65b   : > { %v1928_v62 = vadd.f32 %v4242_v47, %v5500_v45  ;;  %v2037_v43 = vpack.c.bf16 %v1956_v20, %v1955_v9  ;;  %v5603_v13 = vadd.f32 %v1917_v8, %v1523_v51  ;;  %4314 = vmatpush3.bf16.msra.mxu1 %v4653_v29 }
 0x65c   : > { %v1919_v26 = vpop.f32.mrf.mxu0  ;;  %4315 = vmatprep.subr.bf16.mxu1 %v4654_v48 }
 0x65d   : > { %v5607_v7 = vadd.f32 %v1928_v62, %v1526_v38  ;;  %v1920_v15 = vadd.f32 %v5500_v45, %v1919_v26  ;;  %4267 = vmatprep.mubr.bf16.mxu1 %v2037_v43  ;;  %v1959_v51 = vmax.f32 %v5603_v13, 0.0  ;;  %v1961_v38 = vmax.f32 %v5612_v19, 0.0  ;;  %v4649_v45 = vld [vmem:[#allocation9 + $0xc0] sm:$0xff]  }
 0x65e   : > { %4268 = vmatmul.mubr.bf16.gmra.mxu1 %v2038_v10 }
 0x65f   : > { %v5616_v57 = vadd.f32 %v1920_v15, %v1524_v39  ;;  %v1962_v18 = vmax.f32 %v5607_v7, 0.0  ;;  %v4647_v39 = vld [vmem:[#allocation9 + $0xd0] sm:$0xff]   ;;  %4316 = vmatpush3.bf16.msra.mxu1 %v4654_v48 }
 0x660   : > { %4285 = vmatprep.subr.bf16.mxu0 %v4647_v39 }
 0x661   : > { %v1960_v24 = vmax.f32 %v5616_v57, 0.0  ;;  %v2040_v54 = vpack.c.bf16 %v1962_v18, %v1961_v38  ;;  %4286 = vmatpush3.bf16.msra.mxu0 %v4647_v39 }
 0x662   : > { %4287 = vmatprep.subr.bf16.mxu0 %v4648_v49 }
 0x663   : > { %v2039_v44 = vpack.c.bf16 %v1960_v24, %v1959_v51 }
 0x665   : > { %4271 = vmatprep.mubr.bf16.mxu1 %v2039_v44  ;;  %4288 = vmatpush3.bf16.msra.mxu0 %v4648_v49 }
 0x666   : > { %4272 = vmatmul.mubr.bf16.gmra.mxu1 %v2040_v54  ;;  %4289 = vmatprep.subr.bf16.mxu0 %v4649_v45 }
 0x669   : > { %4290 = vmatpush3.bf16.msra.mxu0 %v4649_v45 }
 0x70e   : > { %v4261_v28 = vpop.f32.mrf.mxu1 }
 0x70f   : > { %v2138_v61 = vadd.f32 %v4261_v28, %v3723_v1 }
 0x710   : > { %v2129_v41 = vpop.f32.mrf.mxu1 }
 0x711   : > { %v2130_v12 = vadd.f32 %v3723_v1, %v2129_v41  ;;  %v2194_v21 = vmax.f32 %v2138_v61, 0.0 }
 0x712   : > { %v4262_v6 = vpop.f32.mrf.mxu1 }
 0x713   : > { %v2141_v3 = vadd.f32 %v4262_v6, %v3723_v1  ;;  %v2192_v35 = vmax.f32 %v2130_v12, 0.0 }
 0x714   : > { %v2132_v33 = vpop.f32.mrf.mxu1 }
 0x715   : > { %v2133_v32 = vadd.f32 %v3723_v1, %v2132_v33  ;;  %v2195_v11 = vmax.f32 %v2141_v3, 0.0 }
 0x716   : > { %v4265_v56 = vpop.f32.mrf.mxu1 }
 0x717   : > { %v2193_v63 = vmax.f32 %v2133_v32, 0.0  ;;  %v2209_v47 = vpack.c.bf16 %v2195_v11, %v2194_v21  ;;  %v2154_v10 = vadd.f32 %v4265_v56, %v3723_v1 }
 0x718   : > { %v2145_v8 = vpop.f32.mrf.mxu1 }
 0x719   : > { %v2208_v4 = vpack.c.bf16 %v2193_v63, %v2192_v35  ;;  %v2146_v43 = vadd.f32 %v3723_v1, %v2145_v8  ;;  %v2198_v27 = vmax.f32 %v2154_v10, 0.0 }
 0x71a   : > { %v4266_v62 = vpop.f32.mrf.mxu1 }
 0x71b   : > { %v2157_v26 = vadd.f32 %v4266_v62, %v3723_v1  ;;  %4291 = vmatprep.mubr.bf16.mxu0 %v2208_v4  ;;  %v2196_v49 = vmax.f32 %v2146_v43, 0.0 }
 0x71c   : > { %v2148_v15 = vpop.f32.mrf.mxu1  ;;  %4292 = vmatmul.mubr.bf16.vlgmr.msra.gmra.mxu0 %v2209_v47 }
 0x71d   : > { %v2149_v44 = vadd.f32 %v3723_v1, %v2148_v15  ;;  %v2199_v54 = vmax.f32 %v2157_v26, 0.0 }
 0x71e   : > { %v4269_v39 = vpop.f32.mrf.mxu1 }
 0x71f   : > { %v2197_v45 = vmax.f32 %v2149_v44, 0.0  ;;  %v2211_v29 = vpack.c.bf16 %v2199_v54, %v2198_v27  ;;  %v2170_v6 = vadd.f32 %v4269_v39, %v3723_v1  ;;  %v4656_v27 = vld [vmem:[#allocation8 + $0x108] sm:$0xff]  }
 0x720   : > { %v2161_v30 = vpop.f32.mrf.mxu1 }
 0x721   : > { %v2210_v25 = vpack.c.bf16 %v2197_v45, %v2196_v49  ;;  %v2162_v28 = vadd.f32 %v3723_v1, %v2161_v30  ;;  %v2202_v56 = vmax.f32 %v2170_v6, 0.0  ;;  %v4655_v45 = vld [vmem:[#allocation8 + $0x110] sm:$0xff]   ;;  %v4657_v30 = vld [vmem:[#allocation8 + $0x100] sm:$0xff]  }
 0x722   : > { %v4270_v48 = vpop.f32.mrf.mxu1  ;;  %4317 = vmatprep.subr.bf16.mxu1 %v4655_v45  ;;  %v5633_v6 = vld [vmem:[#allocation11 + $0x3] ss:$0 sm:$0xff] }
 0x723   : > { %v2173_v41 = vadd.f32 %v4270_v48, %v3723_v1  ;;  %4295 = vmatprep.mubr.bf16.mxu0 %v2210_v25  ;;  %v2200_v32 = vmax.f32 %v2162_v28, 0.0  ;;  %4318 = vmatpush3.bf16.msra.mxu1 %v4655_v45  ;;  %v4658_v25 = vld [vmem:[#allocation9 + $0x138] sm:$0xff]   ;;  %v4661_v48 = vld [vmem:[#allocation9 + $0x120] sm:$0xff]  }
 0x724   : > { %v2164_v12 = vpop.f32.mrf.mxu1  ;;  %4296 = vmatmul.mubr.bf16.gmra.mxu0 %v2211_v29  ;;  %4319 = vmatprep.subr.bf16.mxu1 %v4656_v27  ;;  %v4659_v29 = vld [vmem:[#allocation9 + $0x130] sm:$0xff]   ;;  %v4662_v28 = vld [vmem:[#allocation9 + $0x118] sm:$0xff]  }
 0x725   : > { %v2165_v3 = vadd.f32 %v3723_v1, %v2164_v12  ;;  %v2203_v61 = vmax.f32 %v2173_v41, 0.0  ;;  %4339 = vmatprep.subr.bf16.mxu0 %v4658_v25 }
 0x726   : > { %v4273_v33 = vpop.f32.mrf.mxu1  ;;  %4340 = vmatpush3.bf16.msra.mxu0 %v4658_v25 }
 0x727   : > { %v2201_v11 = vmax.f32 %v2165_v3, 0.0  ;;  %v2213_v21 = vpack.c.bf16 %v2203_v61, %v2202_v56  ;;  %v2186_v62 = vadd.f32 %v4273_v33, %v3723_v1  ;;  %4320 = vmatpush3.bf16.msra.mxu1 %v4656_v27  ;;  %4341 = vmatprep.subr.bf16.mxu0 %v4659_v29 }
 0x728   : > { %v2177_v35 = vpop.f32.mrf.mxu1  ;;  %4321 = vmatprep.subr.bf16.mxu1 %v4657_v30 }
 0x729   : > { %v2212_v63 = vpack.c.bf16 %v2201_v11, %v2200_v32  ;;  %v2178_v4 = vadd.f32 %v3723_v1, %v2177_v35  ;;  %v2206_v54 = vmax.f32 %v2186_v62, 0.0 }
 0x72a   : > { %v4274_v8 = vpop.f32.mrf.mxu1  ;;  %4342 = vmatpush3.bf16.msra.mxu0 %v4659_v29 }
 0x72b   : > { %v2189_v47 = vadd.f32 %v4274_v8, %v3723_v1  ;;  %4299 = vmatprep.mubr.bf16.mxu0 %v2212_v63  ;;  %v2204_v15 = vmax.f32 %v2178_v4, 0.0  ;;  %4322 = vmatpush3.bf16.msra.mxu1 %v4657_v30 }
 0x72c   : > { %v2180_v43 = vpop.f32.mrf.mxu1  ;;  %4300 = vmatmul.mubr.bf16.gmra.mxu0 %v2213_v21 }
 0x72d   : > { %v2181_v26 = vadd.f32 %v3723_v1, %v2180_v43  ;;  %v2207_v10 = vmax.f32 %v2189_v47, 0.0  ;;  %v4660_v1 = vld [vmem:[#allocation9 + $0x128] sm:$0xff]  }
 0x72e   : > { %4343 = vmatprep.subr.bf16.mxu0 %v4660_v1 }
 0x72f   : > { %v2205_v44 = vmax.f32 %v2181_v26, 0.0  ;;  %v2215_v49 = vpack.c.bf16 %v2207_v10, %v2206_v54  ;;  %4344 = vmatpush3.bf16.msra.mxu0 %v4660_v1 }
 0x730   : > { %4345 = vmatprep.subr.bf16.mxu0 %v4661_v48 }
 0x731   : > { %v2214_v39 = vpack.c.bf16 %v2205_v44, %v2204_v15 }
 0x733   : > { %4303 = vmatprep.mubr.bf16.mxu0 %v2214_v39  ;;  %4346 = vmatpush3.bf16.msra.mxu0 %v4661_v48 }
 0x734   : > { %4304 = vmatmul.mubr.bf16.gmra.mxu0 %v2215_v49  ;;  %4347 = vmatprep.subr.bf16.mxu0 %v4662_v28 }
 0x737   : > { %4348 = vmatpush3.bf16.msra.mxu0 %v4662_v28 }
 0x7dc   : > { %v4293_v41 = vpop.f32.mrf.mxu0 }
 0x7dd   : > { %v2313_v61 = vadd.f32 %v4293_v41, %v5633_v6 }
 0x7de   : > { %v2304_v12 = vpop.f32.mrf.mxu0 }
 0x7df   : > { %v2305_v3 = vadd.f32 %v5633_v6, %v2304_v12  ;;  %v5649_v21 = vadd.f32 %v2313_v61, %v1949_v17 }
 0x7e0   : > { %v4294_v33 = vpop.f32.mrf.mxu0 }
 0x7e1   : > { %v2316_v32 = vadd.f32 %v4294_v33, %v5633_v6  ;;  %v5640_v56 = vadd.f32 %v2305_v3, %v1947_v59  ;;  %v2385_v62 = vmax.f32 %v5649_v21, 0.0 }
 0x7e2   : > { %v2307_v11 = vpop.f32.mrf.mxu0 }
 0x7e3   : > { %v5644_v35 = vadd.f32 %v2316_v32, %v1950_v16  ;;  %v2308_v63 = vadd.f32 %v5633_v6, %v2307_v11  ;;  %v2383_v59 = vmax.f32 %v5640_v56, 0.0 }
 0x7e4   : > { %v4297_v8 = vpop.f32.mrf.mxu0 }
 0x7e5   : > { %v5653_v4 = vadd.f32 %v2308_v63, %v1948_v22  ;;  %v2386_v47 = vmax.f32 %v5644_v35, 0.0  ;;  %v2329_v55 = vadd.f32 %v4297_v8, %v5633_v6 }
 0x7e6   : > { %v2320_v37 = vpop.f32.mrf.mxu0 }
 0x7e7   : > { %v2384_v0 = vmax.f32 %v5653_v4, 0.0  ;;  %v2321_v16 = vadd.f32 %v5633_v6, %v2320_v37  ;;  %v2470_v22 = vpack.c.bf16 %v2386_v47, %v2385_v62  ;;  %v5681_v54 = vadd.f32 %v2329_v55, %v1953_v50  ;;  %v4666_v55 = vld [vmem:[#allocation8 + $0x178] sm:$0xff]  }
 0x7e8   : > { %v4298_v17 = vpop.f32.mrf.mxu0  ;;  %4371 = vmatprep.subr.bf16.mxu1 %v4666_v55 }
 0x7e9   : > { %v2332_v43 = vadd.f32 %v4298_v17, %v5633_v6  ;;  %v2469_v23 = vpack.c.bf16 %v2384_v0, %v2383_v59  ;;  %v5672_v10 = vadd.f32 %v2321_v16, %v1951_v40  ;;  %v2389_v27 = vmax.f32 %v5681_v54, 0.0  ;;  %v4667_v17 = vld [vmem:[#allocation8 + $0x170] sm:$0xff]  }
 0x7ea   : > { %v2323_v26 = vpop.f32.mrf.mxu0 }
 0x7eb   : > { %v5676_v15 = vadd.f32 %v2332_v43, %v1954_v34  ;;  %v2324_v44 = vadd.f32 %v5633_v6, %v2323_v26  ;;  %4323 = vmatprep.mubr.bf16.mxu1 %v2469_v23  ;;  %v2387_v53 = vmax.f32 %v5672_v10, 0.0  ;;  %v4668_v43 = vld [vmem:[#allocation8 + $0x168] sm:$0xff]   ;;  %v4669_v23 = vld [vmem:[#allocation8 + $0x160] sm:$0xff]  }
 0x7ec   : > { %v4301_v39 = vpop.f32.mrf.mxu0  ;;  %4324 = vmatmul.mubr.bf16.vlgmr.msra.gmra.mxu1 %v2470_v22  ;;  %v4670_v22 = vld [vmem:[#allocation8 + $0x158] sm:$0xff]  }
 0x7ed   : > { %v5685_v49 = vadd.f32 %v2324_v44, %v1952_v5  ;;  %v2390_v46 = vmax.f32 %v5676_v15, 0.0  ;;  %v2345_v42 = vadd.f32 %v4301_v39, %v5633_v6  ;;  %4372 = vmatpush3.bf16.msra.mxu1 %v4666_v55  ;;  %v3742_v39 = vld [vmem:[%s6025_s4 + $0x4] ss:$0 sm:$0xff] }
 0x7ee   : > { %v2336_v40 = vpop.f32.mrf.mxu0  ;;  %4373 = vmatprep.subr.bf16.mxu1 %v4667_v17 }
 0x7ef   : > { %v2388_v34 = vmax.f32 %v5685_v49, 0.0  ;;  %v2337_v45 = vadd.f32 %v5633_v6, %v2336_v40  ;;  %v2472_v25 = vpack.c.bf16 %v2390_v46, %v2389_v27  ;;  %v5713_v28 = vadd.f32 %v2345_v42, %v1957_v14 }
 0x7f0   : > { %v4302_v50 = vpop.f32.mrf.mxu0 }
 0x7f1   : > { %v2348_v30 = vadd.f32 %v4302_v50, %v5633_v6  ;;  %v2471_v58 = vpack.c.bf16 %v2388_v34, %v2387_v53  ;;  %v5704_v29 = vadd.f32 %v2337_v45, %v1955_v9  ;;  %v2393_v61 = vmax.f32 %v5713_v28, 0.0  ;;  %4374 = vmatpush3.bf16.msra.mxu1 %v4667_v17 }
 0x7f2   : > { %v2339_v5 = vpop.f32.mrf.mxu0  ;;  %4375 = vmatprep.subr.bf16.mxu1 %v4668_v43 }
 0x7f3   : > { %v5708_v1 = vadd.f32 %v2348_v30, %v1958_v36  ;;  %v2340_v48 = vadd.f32 %v5633_v6, %v2339_v5  ;;  %4327 = vmatprep.mubr.bf16.mxu1 %v2471_v58  ;;  %v2391_v2 = vmax.f32 %v5704_v29, 0.0 }
 0x7f4   : > { %v4305_v41 = vpop.f32.mrf.mxu0  ;;  %4328 = vmatmul.mubr.bf16.gmra.mxu1 %v2472_v25 }
 0x7f5   : > { %v5717_v12 = vadd.f32 %v2340_v48, %v1956_v20  ;;  %v2394_v52 = vmax.f32 %v5708_v1, 0.0  ;;  %v2361_v31 = vadd.f32 %v4305_v41, %v5633_v6  ;;  %4376 = vmatpush3.bf16.msra.mxu1 %v4668_v43 }
 0x7f6   : > { %v2352_v9 = vpop.f32.mrf.mxu0  ;;  %4377 = vmatprep.subr.bf16.mxu1 %v4669_v23 }
 0x7f7   : > { %v2392_v36 = vmax.f32 %v5717_v12, 0.0  ;;  %v2353_v3 = vadd.f32 %v5633_v6, %v2352_v9  ;;  %v2474_v32 = vpack.c.bf16 %v2394_v52, %v2393_v61  ;;  %v5745_v37 = vadd.f32 %v2361_v31, %v1961_v38  ;;  %v4664_v38 = vld [vmem:[#allocation9 + $0x108] sm:$0xff]  }
 0x7f8   : > { %v4306_v14 = vpop.f32.mrf.mxu0 }
 0x7f9   : > { %v2364_v33 = vadd.f32 %v4306_v14, %v5633_v6  ;;  %v2473_v60 = vpack.c.bf16 %v2392_v36, %v2391_v2  ;;  %v5736_v11 = vadd.f32 %v2353_v3, %v1959_v51  ;;  %4378 = vmatpush3.bf16.msra.mxu1 %v4669_v23 }
 0x7fa   : > { %v2355_v20 = vpop.f32.mrf.mxu0  ;;  %4379 = vmatprep.subr.bf16.mxu1 %v4670_v22 }
 0x7fb   : > { %v5740_v63 = vadd.f32 %v2364_v33, %v1962_v18  ;;  %v2356_v8 = vadd.f32 %v5633_v6, %v2355_v20  ;;  %4331 = vmatprep.mubr.bf16.mxu1 %v2473_v60  ;;  %v2395_v51 = vmax.f32 %v5736_v11, 0.0  ;;  %v2397_v18 = vmax.f32 %v5745_v37, 0.0  ;;  %v4665_v6 = vld [vmem:[#allocation9 + $0x100] sm:$0xff]  }
 0x7fc   : > { %4332 = vmatmul.mubr.bf16.gmra.mxu1 %v2474_v32 }
 0x7fd   : > { %v5749_v16 = vadd.f32 %v2356_v8, %v1960_v24  ;;  %v2398_v13 = vmax.f32 %v5740_v63, 0.0  ;;  %v4663_v24 = vld [vmem:[#allocation9 + $0x110] sm:$0xff]   ;;  %4380 = vmatpush3.bf16.msra.mxu1 %v4670_v22 }
 0x7fe   : > { %4349 = vmatprep.subr.bf16.mxu0 %v4663_v24 }
 0x7ff   : > { %v2396_v7 = vmax.f32 %v5749_v16, 0.0  ;;  %v2476_v57 = vpack.c.bf16 %v2398_v13, %v2397_v18  ;;  %4350 = vmatpush3.bf16.msra.mxu0 %v4663_v24 }
 0x800   : > { %4351 = vmatprep.subr.bf16.mxu0 %v4664_v38 }
 0x801   : > { %v2475_v19 = vpack.c.bf16 %v2396_v7, %v2395_v51 }
 0x803   : > { %4335 = vmatprep.mubr.bf16.mxu1 %v2475_v19  ;;  %4352 = vmatpush3.bf16.msra.mxu0 %v4664_v38 }
 0x804   : > { %4336 = vmatmul.mubr.bf16.gmra.mxu1 %v2476_v57  ;;  %4353 = vmatprep.subr.bf16.mxu0 %v4665_v6 }
 0x807   : > { %4354 = vmatpush3.bf16.msra.mxu0 %v4665_v6 }
 0x8ac   : > { %v4325_v26 = vpop.f32.mrf.mxu1 }
 0x8ad   : > { %v2574_v50 = vadd.f32 %v4325_v26, %v3742_v39 }
 0x8ae   : > { %v2565_v44 = vpop.f32.mrf.mxu1 }
 0x8af   : > { %v2566_v45 = vadd.f32 %v3742_v39, %v2565_v44  ;;  %v2630_v9 = vmax.f32 %v2574_v50, 0.0 }
 0x8b0   : > { %v4326_v40 = vpop.f32.mrf.mxu1 }
 0x8b1   : > { %v2577_v42 = vadd.f32 %v4326_v40, %v3742_v39  ;;  %v2628_v48 = vmax.f32 %v2566_v45, 0.0 }
 0x8b2   : > { %v2568_v30 = vpop.f32.mrf.mxu1 }
 0x8b3   : > { %v2569_v58 = vadd.f32 %v3742_v39, %v2568_v30  ;;  %v2631_v5 = vmax.f32 %v2577_v42, 0.0 }
 0x8b4   : > { %v4329_v25 = vpop.f32.mrf.mxu1 }
 0x8b5   : > { %v2629_v41 = vmax.f32 %v2569_v58, 0.0  ;;  %v2645_v14 = vpack.c.bf16 %v2631_v5, %v2630_v9  ;;  %v2590_v32 = vadd.f32 %v4329_v25, %v3742_v39 }
 0x8b6   : > { %v2581_v3 = vpop.f32.mrf.mxu1 }
 0x8b7   : > { %v2644_v31 = vpack.c.bf16 %v2629_v41, %v2628_v48  ;;  %v2582_v60 = vadd.f32 %v3742_v39, %v2581_v3  ;;  %v2634_v55 = vmax.f32 %v2590_v32, 0.0 }
 0x8b8   : > { %v4330_v33 = vpop.f32.mrf.mxu1 }
 0x8b9   : > { %v2593_v20 = vadd.f32 %v4330_v33, %v3742_v39  ;;  %4355 = vmatprep.mubr.bf16.mxu0 %v2644_v31  ;;  %v2632_v38 = vmax.f32 %v2582_v60, 0.0 }
 0x8ba   : > { %v2584_v8 = vpop.f32.mrf.mxu1  ;;  %4356 = vmatmul.mubr.bf16.vlgmr.msra.gmra.mxu0 %v2645_v14 }
 0x8bb   : > { %v2585_v19 = vadd.f32 %v3742_v39, %v2584_v8  ;;  %v2635_v57 = vmax.f32 %v2593_v20, 0.0 }
 0x8bc   : > { %v4333_v24 = vpop.f32.mrf.mxu1 }
 0x8bd   : > { %v2633_v6 = vmax.f32 %v2585_v19, 0.0  ;;  %v2647_v23 = vpack.c.bf16 %v2635_v57, %v2634_v55  ;;  %v2606_v40 = vadd.f32 %v4333_v24, %v3742_v39  ;;  %v4672_v55 = vld [vmem:[#allocation8 + $0x148] sm:$0xff]  }
 0x8be   : > { %v2597_v17 = vpop.f32.mrf.mxu1 }
 0x8bf   : > { %v2646_v43 = vpack.c.bf16 %v2633_v6, %v2632_v38  ;;  %v2598_v26 = vadd.f32 %v3742_v39, %v2597_v17  ;;  %v2638_v25 = vmax.f32 %v2606_v40, 0.0  ;;  %v4671_v6 = vld [vmem:[#allocation8 + $0x150] sm:$0xff]   ;;  %v4673_v17 = vld [vmem:[#allocation8 + $0x140] sm:$0xff]  }
 0x8c0   : > { %v4334_v22 = vpop.f32.mrf.mxu1  ;;  %4381 = vmatprep.subr.bf16.mxu1 %v4671_v6  ;;  %v5766_v40 = vld [vmem:[#allocation11 + $0x4] ss:$0 sm:$0xff] }
 0x8c1   : > { %v2609_v44 = vadd.f32 %v4334_v22, %v3742_v39  ;;  %4359 = vmatprep.mubr.bf16.mxu0 %v2646_v43  ;;  %v2636_v58 = vmax.f32 %v2598_v26, 0.0  ;;  %4382 = vmatpush3.bf16.msra.mxu1 %v4671_v6  ;;  %v4674_v43 = vld [vmem:[#allocation9 + $0x178] sm:$0xff]   ;;  %v4677_v22 = vld [vmem:[#allocation9 + $0x160] sm:$0xff]  }
 0x8c2   : > { %v2600_v45 = vpop.f32.mrf.mxu1  ;;  %4360 = vmatmul.mubr.bf16.gmra.mxu0 %v2647_v23  ;;  %4383 = vmatprep.subr.bf16.mxu1 %v4672_v55  ;;  %v4675_v23 = vld [vmem:[#allocation9 + $0x170] sm:$0xff]   ;;  %v4678_v26 = vld [vmem:[#allocation9 + $0x158] sm:$0xff]  }
 0x8c3   : > { %v2601_v42 = vadd.f32 %v3742_v39, %v2600_v45  ;;  %v2639_v50 = vmax.f32 %v2609_v44, 0.0  ;;  %4403 = vmatprep.subr.bf16.mxu0 %v4674_v43 }
 0x8c4   : > { %v4337_v30 = vpop.f32.mrf.mxu1  ;;  %4404 = vmatpush3.bf16.msra.mxu0 %v4674_v43 }
 0x8c5   : > { %v2637_v5 = vmax.f32 %v2601_v42, 0.0  ;;  %v2649_v9 = vpack.c.bf16 %v2639_v50, %v2638_v25  ;;  %v2622_v33 = vadd.f32 %v4337_v30, %v3742_v39  ;;  %4384 = vmatpush3.bf16.msra.mxu1 %v4672_v55  ;;  %4405 = vmatprep.subr.bf16.mxu0 %v4675_v23 }
 0x8c6   : > { %v2613_v48 = vpop.f32.mrf.mxu1  ;;  %4385 = vmatprep.subr.bf16.mxu1 %v4673_v17 }
 0x8c7   : > { %v2648_v41 = vpack.c.bf16 %v2637_v5, %v2636_v58  ;;  %v2614_v31 = vadd.f32 %v3742_v39, %v2613_v48  ;;  %v2642_v57 = vmax.f32 %v2622_v33, 0.0 }
 0x8c8   : > { %v4338_v3 = vpop.f32.mrf.mxu1  ;;  %4406 = vmatpush3.bf16.msra.mxu0 %v4675_v23 }
 0x8c9   : > { %v2625_v14 = vadd.f32 %v4338_v3, %v3742_v39  ;;  %4363 = vmatprep.mubr.bf16.mxu0 %v2648_v41  ;;  %v2640_v8 = vmax.f32 %v2614_v31, 0.0  ;;  %4386 = vmatpush3.bf16.msra.mxu1 %v4673_v17 }
 0x8ca   : > { %v2616_v60 = vpop.f32.mrf.mxu1  ;;  %4364 = vmatmul.mubr.bf16.gmra.mxu0 %v2649_v9 }
 0x8cb   : > { %v2617_v20 = vadd.f32 %v3742_v39, %v2616_v60  ;;  %v2643_v32 = vmax.f32 %v2625_v14, 0.0  ;;  %v4676_v39 = vld [vmem:[#allocation9 + $0x168] sm:$0xff]  }
 0x8cc   : > { %4407 = vmatprep.subr.bf16.mxu0 %v4676_v39 }
 0x8cd   : > { %v2641_v19 = vmax.f32 %v2617_v20, 0.0  ;;  %v2651_v38 = vpack.c.bf16 %v2643_v32, %v2642_v57  ;;  %4408 = vmatpush3.bf16.msra.mxu0 %v4676_v39 }
 0x8ce   : > { %4409 = vmatprep.subr.bf16.mxu0 %v4677_v22 }
 0x8cf   : > { %v2650_v24 = vpack.c.bf16 %v2641_v19, %v2640_v8 }
 0x8d1   : > { %4367 = vmatprep.mubr.bf16.mxu0 %v2650_v24  ;;  %4410 = vmatpush3.bf16.msra.mxu0 %v4677_v22 }
 0x8d2   : > { %4368 = vmatmul.mubr.bf16.gmra.mxu0 %v2651_v38  ;;  %4411 = vmatprep.subr.bf16.mxu0 %v4678_v26 }
 0x8d5   : > { %4412 = vmatpush3.bf16.msra.mxu0 %v4678_v26 }
 0x97a   : > { %v4357_v44 = vpop.f32.mrf.mxu0 }
 0x97b   : > { %v2749_v50 = vadd.f32 %v4357_v44, %v5766_v40 }
 0x97c   : > { %v2740_v45 = vpop.f32.mrf.mxu0 }
 0x97d   : > { %v2741_v42 = vadd.f32 %v5766_v40, %v2740_v45  ;;  %v5782_v9 = vadd.f32 %v2749_v50, %v2385_v62 }
 0x97e   : > { %v4358_v30 = vpop.f32.mrf.mxu0 }
 0x97f   : > { %v2752_v58 = vadd.f32 %v4358_v30, %v5766_v40  ;;  %v5773_v25 = vadd.f32 %v2741_v42, %v2383_v59  ;;  %v2821_v33 = vmax.f32 %v5782_v9, 0.0 }
 0x980   : > { %v2743_v5 = vpop.f32.mrf.mxu0 }
 0x981   : > { %v5777_v48 = vadd.f32 %v2752_v58, %v2386_v47  ;;  %v2744_v41 = vadd.f32 %v5766_v40, %v2743_v5  ;;  %v2819_v59 = vmax.f32 %v5773_v25, 0.0 }
 0x982   : > { %v4361_v3 = vpop.f32.mrf.mxu0 }
 0x983   : > { %v5786_v31 = vadd.f32 %v2744_v41, %v2384_v0  ;;  %v2822_v14 = vmax.f32 %v5777_v48, 0.0  ;;  %v2765_v21 = vadd.f32 %v4361_v3, %v5766_v40 }
 0x984   : > { %v2756_v56 = vpop.f32.mrf.mxu0 }
 0x985   : > { %v2820_v35 = vmax.f32 %v5786_v31, 0.0  ;;  %v2757_v47 = vadd.f32 %v5766_v40, %v2756_v56  ;;  %v2906_v0 = vpack.c.bf16 %v2822_v14, %v2821_v33  ;;  %v5814_v57 = vadd.f32 %v2765_v21, %v2389_v27  ;;  %v4682_v21 = vld [vmem:[#allocation12 + $0x38] sm:$0xff]  }
 0x986   : > { %v4362_v62 = vpop.f32.mrf.mxu0  ;;  %4435 = vmatprep.subr.bf16.mxu1 %v4682_v21 }
 0x987   : > { %v2768_v60 = vadd.f32 %v4362_v62, %v5766_v40  ;;  %v2905_v4 = vpack.c.bf16 %v2820_v35, %v2819_v59  ;;  %v5805_v32 = vadd.f32 %v2757_v47, %v2387_v53  ;;  %v2825_v55 = vmax.f32 %v5814_v57, 0.0  ;;  %v4683_v62 = vld [vmem:[#allocation12 + $0x30] sm:$0xff]  }
 0x988   : > { %v2759_v20 = vpop.f32.mrf.mxu0 }
 0x989   : > { %v5809_v8 = vadd.f32 %v2768_v60, %v2390_v46  ;;  %v2760_v19 = vadd.f32 %v5766_v40, %v2759_v20  ;;  %4387 = vmatprep.mubr.bf16.mxu1 %v2905_v4  ;;  %v2823_v15 = vmax.f32 %v5805_v32, 0.0  ;;  %v4684_v60 = vld [vmem:[#allocation12 + $0x28] sm:$0xff]   ;;  %v4685_v4 = vld [vmem:[#allocation12 + $0x20] sm:$0xff]  }
 0x98a   : > { %v4365_v24 = vpop.f32.mrf.mxu0  ;;  %4388 = vmatmul.mubr.bf16.vlgmr.msra.gmra.mxu1 %v2906_v0  ;;  %v4686_v0 = vld [vmem:[#allocation12 + $0x18] sm:$0xff]  }
 0x98b   : > { %v5818_v38 = vadd.f32 %v2760_v19, %v2388_v34  ;;  %v2826_v10 = vmax.f32 %v5809_v8, 0.0  ;;  %v2781_v54 = vadd.f32 %v4365_v24, %v5766_v40  ;;  %4436 = vmatpush3.bf16.msra.mxu1 %v4682_v21  ;;  %v3761_v24 = vld [vmem:[%s6025_s4 + $0x5] ss:$0 sm:$0xff] }
 0x98c   : > { %v2772_v53 = vpop.f32.mrf.mxu0  ;;  %4437 = vmatprep.subr.bf16.mxu1 %v4683_v62 }
 0x98d   : > { %v2824_v46 = vmax.f32 %v5818_v38, 0.0  ;;  %v2773_v6 = vadd.f32 %v5766_v40, %v2772_v53  ;;  %v2908_v43 = vpack.c.bf16 %v2826_v10, %v2825_v55  ;;  %v5846_v26 = vadd.f32 %v2781_v54, %v2393_v61 }
 0x98e   : > { %v4366_v27 = vpop.f32.mrf.mxu0 }
 0x98f   : > { %v2784_v17 = vadd.f32 %v4366_v27, %v5766_v40  ;;  %v2907_v49 = vpack.c.bf16 %v2824_v46, %v2823_v15  ;;  %v5837_v23 = vadd.f32 %v2773_v6, %v2391_v2  ;;  %v2829_v50 = vmax.f32 %v5846_v26, 0.0  ;;  %4438 = vmatpush3.bf16.msra.mxu1 %v4683_v62 }
 0x990   : > { %v2775_v34 = vpop.f32.mrf.mxu0  ;;  %4439 = vmatprep.subr.bf16.mxu1 %v4684_v60 }
 0x991   : > { %v5841_v39 = vadd.f32 %v2784_v17, %v2394_v52  ;;  %v2776_v22 = vadd.f32 %v5766_v40, %v2775_v34  ;;  %4391 = vmatprep.mubr.bf16.mxu1 %v2907_v49  ;;  %v2827_v1 = vmax.f32 %v5837_v23, 0.0 }
 0x992   : > { %v4369_v44 = vpop.f32.mrf.mxu0  ;;  %4392 = vmatmul.mubr.bf16.gmra.mxu1 %v2908_v43 }
 0x993   : > { %v5850_v45 = vadd.f32 %v2776_v22, %v2392_v36  ;;  %v2830_v29 = vmax.f32 %v5841_v39, 0.0  ;;  %v2797_v28 = vadd.f32 %v4369_v44, %v5766_v40  ;;  %4440 = vmatpush3.bf16.msra.mxu1 %v4684_v60 }
 0x994   : > { %v2788_v2 = vpop.f32.mrf.mxu0  ;;  %4441 = vmatprep.subr.bf16.mxu1 %v4685_v4 }
 0x995   : > { %v2828_v52 = vmax.f32 %v5850_v45, 0.0  ;;  %v2789_v42 = vadd.f32 %v5766_v40, %v2788_v2  ;;  %v2910_v58 = vpack.c.bf16 %v2830_v29, %v2829_v50  ;;  %v5878_v56 = vadd.f32 %v2797_v28, %v2397_v18  ;;  %v4680_v18 = vld [vmem:[#allocation9 + $0x148] sm:$0xff]  }
 0x996   : > { %v4370_v61 = vpop.f32.mrf.mxu0 }
 0x997   : > { %v2800_v30 = vadd.f32 %v4370_v61, %v5766_v40  ;;  %v2909_v12 = vpack.c.bf16 %v2828_v52, %v2827_v1  ;;  %v5869_v5 = vadd.f32 %v2789_v42, %v2395_v51  ;;  %4442 = vmatpush3.bf16.msra.mxu1 %v4685_v4 }
 0x998   : > { %v2791_v36 = vpop.f32.mrf.mxu0  ;;  %4443 = vmatprep.subr.bf16.mxu1 %v4686_v0 }
 0x999   : > { %v5873_v41 = vadd.f32 %v2800_v30, %v2398_v13  ;;  %v2792_v3 = vadd.f32 %v5766_v40, %v2791_v36  ;;  %4395 = vmatprep.mubr.bf16.mxu1 %v2909_v12  ;;  %v2831_v51 = vmax.f32 %v5869_v5, 0.0  ;;  %v2833_v13 = vmax.f32 %v5878_v56, 0.0  ;;  %v4681_v40 = vld [vmem:[#allocation9 + $0x140] sm:$0xff]  }
 0x99a   : > { %4396 = vmatmul.mubr.bf16.gmra.mxu1 %v2910_v58 }
 0x99b   : > { %v5882_v47 = vadd.f32 %v2792_v3, %v2396_v7  ;;  %v2834_v11 = vmax.f32 %v5873_v41, 0.0  ;;  %v4679_v7 = vld [vmem:[#allocation9 + $0x150] sm:$0xff]   ;;  %4444 = vmatpush3.bf16.msra.mxu1 %v4686_v0  ;;  %v3779_v41 = vld [vmem:[%s6029_s8] ss:$0 sm:$0xff] }
 0x99c   : > { %4413 = vmatprep.subr.bf16.mxu0 %v4679_v7 }
 0x99d   : > { %v2832_v63 = vmax.f32 %v5882_v47, 0.0  ;;  %v2912_v16 = vpack.c.bf16 %v2834_v11, %v2833_v13  ;;  %4414 = vmatpush3.bf16.msra.mxu0 %v4679_v7 }
 0x99e   : > { %4415 = vmatprep.subr.bf16.mxu0 %v4680_v18 }
 0x99f   : > { %v2911_v37 = vpack.c.bf16 %v2832_v63, %v2831_v51 }
 0x9a1   : > { %4399 = vmatprep.mubr.bf16.mxu1 %v2911_v37  ;;  %4416 = vmatpush3.bf16.msra.mxu0 %v4680_v18 }
 0x9a2   : > { %4400 = vmatmul.mubr.bf16.gmra.mxu1 %v2912_v16  ;;  %4417 = vmatprep.subr.bf16.mxu0 %v4681_v40 }
 0x9a5   : > { %4418 = vmatpush3.bf16.msra.mxu0 %v4681_v40 }
 0xa4a   : > { %v4389_v20 = vpop.f32.mrf.mxu1 }
 0xa4b   : > { %v3010_v27 = vadd.f32 %v4389_v20, %v3761_v24 }
 0xa4c   : > { %v3001_v19 = vpop.f32.mrf.mxu1 }
 0xa4d   : > { %v3002_v6 = vadd.f32 %v3761_v24, %v3001_v19  ;;  %v3066_v2 = vmax.f32 %v3010_v27, 0.0 }
 0xa4e   : > { %v4390_v53 = vpop.f32.mrf.mxu1 }
 0xa4f   : > { %v3013_v54 = vadd.f32 %v4390_v53, %v3761_v24  ;;  %v3064_v22 = vmax.f32 %v3002_v6, 0.0 }
 0xa50   : > { %v3004_v17 = vpop.f32.mrf.mxu1 }
 0xa51   : > { %v3005_v49 = vadd.f32 %v3761_v24, %v3004_v17  ;;  %v3067_v34 = vmax.f32 %v3013_v54, 0.0 }
 0xa52   : > { %v4393_v43 = vpop.f32.mrf.mxu1 }
 0xa53   : > { %v3065_v44 = vmax.f32 %v3005_v49, 0.0  ;;  %v3081_v61 = vpack.c.bf16 %v3067_v34, %v3066_v2  ;;  %v3026_v58 = vadd.f32 %v4393_v43, %v3761_v24 }
 0xa54   : > { %v3017_v42 = vpop.f32.mrf.mxu1 }
 0xa55   : > { %v3080_v28 = vpack.c.bf16 %v3065_v44, %v3064_v22  ;;  %v3018_v12 = vadd.f32 %v3761_v24, %v3017_v42  ;;  %v3070_v21 = vmax.f32 %v3026_v58, 0.0 }
 0xa56   : > { %v4394_v30 = vpop.f32.mrf.mxu1 }
 0xa57   : > { %v3029_v36 = vadd.f32 %v4394_v30, %v3761_v24  ;;  %4419 = vmatprep.mubr.bf16.mxu0 %v3080_v28  ;;  %v3068_v18 = vmax.f32 %v3018_v12, 0.0 }
 0xa58   : > { %v3020_v3 = vpop.f32.mrf.mxu1  ;;  %4420 = vmatmul.mubr.bf16.vlgmr.msra.gmra.mxu0 %v3081_v61 }
 0xa59   : > { %v3021_v37 = vadd.f32 %v3761_v24, %v3020_v3  ;;  %v3071_v16 = vmax.f32 %v3029_v36, 0.0 }
 0xa5a   : > { %v4397_v7 = vpop.f32.mrf.mxu1 }
 0xa5b   : > { %v3069_v40 = vmax.f32 %v3021_v37, 0.0  ;;  %v3083_v4 = vpack.c.bf16 %v3071_v16, %v3070_v21  ;;  %v3042_v53 = vadd.f32 %v4397_v7, %v3761_v24  ;;  %v4688_v21 = vld [vmem:[#allocation12 + $0x8] sm:$0xff]  }
 0xa5c   : > { %v3033_v62 = vpop.f32.mrf.mxu1 }
 0xa5d   : > { %v3082_v60 = vpack.c.bf16 %v3069_v40, %v3068_v18  ;;  %v3034_v20 = vadd.f32 %v3761_v24, %v3033_v62  ;;  %v3074_v43 = vmax.f32 %v3042_v53, 0.0  ;;  %v4687_v40 = vld [vmem:[#allocation12 + $0x10] sm:$0xff]   ;;  %v4689_v62 = vld [vmem:[#allocation12] sm:$0xff]  }
 0xa5e   : > { %v4398_v0 = vpop.f32.mrf.mxu1  ;;  %4445 = vmatprep.subr.bf16.mxu1 %v4687_v40 }
 0xa5f   : > { %v3045_v19 = vadd.f32 %v4398_v0, %v3761_v24  ;;  %4423 = vmatprep.mubr.bf16.mxu0 %v3082_v60  ;;  %v3072_v49 = vmax.f32 %v3034_v20, 0.0  ;;  %4446 = vmatpush3.bf16.msra.mxu1 %v4687_v40 }
 0xa60   : > { %v3036_v6 = vpop.f32.mrf.mxu1  ;;  %4424 = vmatmul.mubr.bf16.gmra.mxu0 %v3083_v4  ;;  %4447 = vmatprep.subr.bf16.mxu1 %v4688_v21  ;;  %v5899_v4 = vld [vmem:[#allocation11 + $0x5] ss:$0 sm:$0xff] }
 0xa61   : > { %v3037_v54 = vadd.f32 %v3761_v24, %v3036_v6  ;;  %v3075_v27 = vmax.f32 %v3045_v19, 0.0 }
 0xa62   : > { %v4401_v17 = vpop.f32.mrf.mxu1 }
 0xa63   : > { %v3073_v34 = vmax.f32 %v3037_v54, 0.0  ;;  %v3085_v2 = vpack.c.bf16 %v3075_v27, %v3074_v43  ;;  %v3058_v30 = vadd.f32 %v4401_v17, %v3761_v24  ;;  %4448 = vmatpush3.bf16.msra.mxu1 %v4688_v21 }
 0xa64   : > { %v3049_v22 = vpop.f32.mrf.mxu1  ;;  %4449 = vmatprep.subr.bf16.mxu1 %v4689_v62 }
 0xa65   : > { %v3084_v44 = vpack.c.bf16 %v3073_v34, %v3072_v49  ;;  %v3050_v28 = vadd.f32 %v3761_v24, %v3049_v22  ;;  %v3078_v16 = vmax.f32 %v3058_v30, 0.0 }
 0xa66   : > { %v4402_v42 = vpop.f32.mrf.mxu1 }
 0xa67   : > { %v3061_v61 = vadd.f32 %v4402_v42, %v3761_v24  ;;  %4427 = vmatprep.mubr.bf16.mxu0 %v3084_v44  ;;  %v3076_v3 = vmax.f32 %v3050_v28, 0.0  ;;  %4450 = vmatpush3.bf16.msra.mxu1 %v4689_v62 }
 0xa68   : > { %v3052_v12 = vpop.f32.mrf.mxu1  ;;  %4428 = vmatmul.mubr.bf16.gmra.mxu0 %v3085_v2 }
 0xa69   : > { %v3053_v36 = vadd.f32 %v3761_v24, %v3052_v12  ;;  %v3079_v58 = vmax.f32 %v3061_v61, 0.0 }
 0xa6b   : > { %v3077_v37 = vmax.f32 %v3053_v36, 0.0  ;;  %v3087_v18 = vpack.c.bf16 %v3079_v58, %v3078_v16 }
 0xa6d   : > { %v3086_v7 = vpack.c.bf16 %v3077_v37, %v3076_v3 }
 0xa6f   : > { %4431 = vmatprep.mubr.bf16.mxu0 %v3086_v7 }
 0xa70   : > { %4432 = vmatmul.mubr.bf16.gmra.mxu0 %v3087_v18 }
 0xb18   : > { %v4421_v60 = vpop.f32.mrf.mxu0 }
 0xb19   : > { %v3185_v20 = vadd.f32 %v4421_v60, %v5899_v4 }
 0xb1a   : > { %v3176_v24 = vpop.f32.mrf.mxu0 }
 0xb1b   : > { %v3177_v0 = vadd.f32 %v5899_v4, %v3176_v24  ;;  %v3241_v49 = vadd.f32 %v3185_v20, %v2821_v33 }
 0xb1c   : > { %v4422_v19 = vpop.f32.mrf.mxu0 }
 0xb1d   : > { %v3188_v53 = vadd.f32 %v4422_v19, %v5899_v4  ;;  %v3239_v54 = vadd.f32 %v3177_v0, %v2819_v59  ;;  %v3257_v25 = vmax.f32 %v3241_v49, 0.0 }
 0xb1e   : > { %v3179_v6 = vpop.f32.mrf.mxu0 }
 0xb1f   : > { %v3242_v27 = vadd.f32 %v3188_v53, %v2822_v14  ;;  %v3180_v17 = vadd.f32 %v5899_v4, %v3179_v6  ;;  %v3255_v2 = vmax.f32 %v3239_v54, 0.0 }
 0xb20   : > { %v4425_v34 = vpop.f32.mrf.mxu0 }
 0xb21   : > { %v3240_v43 = vadd.f32 %v3180_v17, %v2820_v35  ;;  %v3258_v22 = vmax.f32 %v3242_v27, 0.0  ;;  %v3201_v59 = vadd.f32 %v4425_v34, %v5899_v4 }
 0xb22   : > { %v3192_v44 = vpop.f32.mrf.mxu0 }
 0xb23   : > { %v3256_v42 = vmax.f32 %v3240_v43, 0.0  ;;  %v3193_v28 = vadd.f32 %v5899_v4, %v3192_v44  ;;  %v3304_v30 = vpack.c.bf16 %v3258_v22, %v3257_v25  ;;  %v3245_v12 = vadd.f32 %v3201_v59, %v2825_v55 }
 0xb24   : > { %v4426_v48 = vpop.f32.mrf.mxu0 }
 0xb25   : > { %v3204_v14 = vadd.f32 %v4426_v48, %v5899_v4  ;;  %v3303_v61 = vpack.c.bf16 %v3256_v42, %v3255_v2  ;;  %v3243_v33 = vadd.f32 %v3193_v28, %v2823_v15  ;;  %v3261_v15 = vmax.f32 %v3245_v12, 0.0 }
 0xb26   : > { %v3195_v9 = vpop.f32.mrf.mxu0 }
 0xb27   : > { %v3246_v31 = vadd.f32 %v3204_v14, %v2826_v10  ;;  %v3196_v35 = vadd.f32 %v5899_v4, %v3195_v9  ;;  %4451 = vmatprep.mubr.bf16.mxu1 %v3303_v61  ;;  %v3259_v16 = vmax.f32 %v3243_v33, 0.0 }
 0xb28   : > { %v4429_v36 = vpop.f32.mrf.mxu0  ;;  %4452 = vmatmul.mubr.bf16.vlgmr.msra.gmra.mxu1 %v3304_v30 }
 0xb29   : > { %v3244_v58 = vadd.f32 %v3196_v35, %v2824_v46  ;;  %v3262_v3 = vmax.f32 %v3246_v31, 0.0  ;;  %v3217_v8 = vadd.f32 %v4429_v36, %v5899_v4 }
 0xb2a   : > { %v3208_v37 = vpop.f32.mrf.mxu0 }
 0xb2b   : > { %v3260_v7 = vmax.f32 %v3244_v58, 0.0  ;;  %v3209_v32 = vadd.f32 %v5899_v4, %v3208_v37  ;;  %v3306_v55 = vpack.c.bf16 %v3262_v3, %v3261_v15  ;;  %v3249_v62 = vadd.f32 %v3217_v8, %v2829_v50 }
 0xb2c   : > { %v4430_v10 = vpop.f32.mrf.mxu0 }
 0xb2d   : > { %v3220_v18 = vadd.f32 %v4430_v10, %v5899_v4  ;;  %v3305_v40 = vpack.c.bf16 %v3260_v7, %v3259_v16  ;;  %v3247_v21 = vadd.f32 %v3209_v32, %v2827_v1  ;;  %v3265_v1 = vmax.f32 %v3249_v62, 0.0 }
 0xb2e   : > { %v3211_v57 = vpop.f32.mrf.mxu0 }
 0xb2f   : > { %v3250_v38 = vadd.f32 %v3220_v18, %v2830_v29  ;;  %v3212_v46 = vadd.f32 %v5899_v4, %v3211_v57  ;;  %4455 = vmatprep.mubr.bf16.mxu1 %v3305_v40  ;;  %v3263_v19 = vmax.f32 %v3247_v21, 0.0 }
 0xb30   : > { %v4433_v60 = vpop.f32.mrf.mxu0  ;;  %4456 = vmatmul.mubr.bf16.gmra.mxu1 %v3306_v55 }
 0xb31   : > { %v3248_v24 = vadd.f32 %v3212_v46, %v2828_v52  ;;  %v3266_v0 = vmax.f32 %v3250_v38, 0.0  ;;  %v3233_v39 = vadd.f32 %v4433_v60, %v5899_v4 }
 0xb32   : > { %v3224_v20 = vpop.f32.mrf.mxu0 }
 0xb33   : > { %v3264_v53 = vmax.f32 %v3248_v24, 0.0  ;;  %v3225_v23 = vadd.f32 %v5899_v4, %v3224_v20  ;;  %v3308_v50 = vpack.c.bf16 %v3266_v0, %v3265_v1  ;;  %v3253_v17 = vadd.f32 %v3233_v39, %v2833_v13 }
 0xb34   : > { %v4434_v29 = vpop.f32.mrf.mxu0 }
 0xb35   : > { %v3236_v6 = vadd.f32 %v4434_v29, %v5899_v4  ;;  %v3307_v54 = vpack.c.bf16 %v3264_v53, %v3263_v19  ;;  %v3251_v45 = vadd.f32 %v3225_v23, %v2831_v51  ;;  %v3269_v44 = vmax.f32 %v3253_v17, 0.0 }
 0xb36   : > { %v3227_v26 = vpop.f32.mrf.mxu0 }
 0xb37   : > { %v3254_v52 = vadd.f32 %v3236_v6, %v2834_v11  ;;  %v3228_v27 = vadd.f32 %v5899_v4, %v3227_v26  ;;  %4459 = vmatprep.mubr.bf16.mxu1 %v3307_v54  ;;  %v3267_v43 = vmax.f32 %v3251_v45, 0.0 }
 0xb38   : > { %4460 = vmatmul.mubr.bf16.gmra.mxu1 %v3308_v50 }
 0xb39   : > { %v3252_v49 = vadd.f32 %v3228_v27, %v2832_v63  ;;  %v3270_v34 = vmax.f32 %v3254_v52, 0.0 }
 0xb3b   : > { %v3268_v22 = vmax.f32 %v3252_v49, 0.0  ;;  %v3310_v2 = vpack.c.bf16 %v3270_v34, %v3269_v44 }
 0xb3d   : > { %v3309_v5 = vpack.c.bf16 %v3268_v22, %v3267_v43 }
 0xb3f   : > { %4463 = vmatprep.mubr.bf16.mxu1 %v3309_v5 }
 0xb40   : > { %4464 = vmatmul.mubr.bf16.gmra.mxu1 %v3310_v2 }
 0xbe8   : > { %v4453_v11 = vpop.f32.mrf.mxu1 }
 0xbe9   : > { %v3425_v56 = vadd.f32 %v4453_v11, %v3779_v41 }
 0xbea   : > { %v3416_v51 = vpop.f32.mrf.mxu1 }
 0xbeb   : > { %3481 = vst [vmem:[%s5953_s28 + $0x10] sm:$0xff] %v3425_v56  ;;  %v3417_v47 = vadd.f32 %v3779_v41, %v3416_v51 }
 0xbec   : > { %v4454_v63 = vpop.f32.mrf.mxu1 }
 0xbed   : > { %3479 = vst [vmem:[%s5953_s28] sm:$0xff] %v3417_v47  ;;  %v3428_v13 = vadd.f32 %v4454_v63, %v3779_v41 }
 0xbee   : > { %v3419_v4 = vpop.f32.mrf.mxu1 }
 0xbef   : > { %3482 = vst [vmem:[%s5953_s28 + $0x18] sm:$0xff] %v3428_v13  ;;  %v3420_v42 = vadd.f32 %v3779_v41, %v3419_v4 }
 0xbf0   : > { %v4457_v28 = vpop.f32.mrf.mxu1 }
 0xbf1   : > { %3480 = vst [vmem:[%s5953_s28 + $0x8] sm:$0xff] %v3420_v42  ;;  %v3441_v25 = vadd.f32 %v4457_v28, %v3779_v41 }
 0xbf2   : > { %v3432_v59 = vpop.f32.mrf.mxu1 }
 0xbf3   : > { %3485 = vst [vmem:[%s5953_s28 + $0x30] sm:$0xff] %v3441_v25  ;;  %v3433_v48 = vadd.f32 %v3779_v41, %v3432_v59 }
 0xbf4   : > { %v4458_v14 = vpop.f32.mrf.mxu1 }
 0xbf5   : > { %3483 = vst [vmem:[%s5953_s28 + $0x20] sm:$0xff] %v3433_v48  ;;  %v3444_v61 = vadd.f32 %v4458_v14, %v3779_v41 }
 0xbf6   : > { %v3435_v30 = vpop.f32.mrf.mxu1 }
 0xbf7   : > { %3486 = vst [vmem:[%s5953_s28 + $0x38] sm:$0xff] %v3444_v61  ;;  %v3436_v9 = vadd.f32 %v3779_v41, %v3435_v30 }
 0xbf8   : > { %v4461_v33 = vpop.f32.mrf.mxu1 }
 0xbf9   : > { %3484 = vst [vmem:[%s5953_s28 + $0x28] sm:$0xff] %v3436_v9  ;;  %v3457_v31 = vadd.f32 %v4461_v33, %v3779_v41 }
 0xbfa   : > { %v3448_v35 = vpop.f32.mrf.mxu1 }
 0xbfb   : > { %3489 = vst [vmem:[%s5953_s28 + $0x50] sm:$0xff] %v3457_v31  ;;  %v3449_v12 = vadd.f32 %v3779_v41, %v3448_v35 }
 0xbfc   : > { %v4462_v36 = vpop.f32.mrf.mxu1 }
 0xbfd   : > { %3487 = vst [vmem:[%s5953_s28 + $0x40] sm:$0xff] %v3449_v12  ;;  %v3460_v58 = vadd.f32 %v4462_v36, %v3779_v41 }
 0xbfe   : > { %v3451_v3 = vpop.f32.mrf.mxu1 }
 0xbff   : > { %3490 = vst [vmem:[%s5953_s28 + $0x58] sm:$0xff] %v3460_v58  ;;  %v3452_v37 = vadd.f32 %v3779_v41, %v3451_v3 }
 0xc00   : > { %v4465_v16 = vpop.f32.mrf.mxu1 }
 0xc01   : > { %3488 = vst [vmem:[%s5953_s28 + $0x48] sm:$0xff] %v3452_v37  ;;  %v3473_v7 = vadd.f32 %v4465_v16, %v3779_v41 }
 0xc02   : > { %v3464_v32 = vpop.f32.mrf.mxu1 }
 0xc03   : > { %3493 = vst [vmem:[%s5953_s28 + $0x70] sm:$0xff] %v3473_v7  ;;  %v3465_v15 = vadd.f32 %v3779_v41, %v3464_v32 }
 0xc04   : > { %v4466_v8 = vpop.f32.mrf.mxu1 }
 0xc05   : > { %3491 = vst [vmem:[%s5953_s28 + $0x60] sm:$0xff] %v3465_v15  ;;  %v3476_v10 = vadd.f32 %v4466_v8, %v3779_v41 }
 0xc06   : > { %v3467_v18 = vpop.f32.mrf.mxu1 }
 0xc07   : > { %3494 = vst [vmem:[%s5953_s28 + $0x78] sm:$0xff] %v3476_v10  ;;  %v3468_v40 = vadd.f32 %v3779_v41, %v3467_v18 }
 0xc09   : > { %3492 = vst [vmem:[%s5953_s28 + $0x68] sm:$0xff] %v3468_v40 }
 0xc0a   : > { %4861 = shalt.err (!%p4858_p3)
}
 0xc0b   : > { %s4862_s18 = scalar_lea.hbm %s5974_s17, 2048  ;;  %s4866_s25 = scalar_lea.hbm %s6030_s9, 4096 }
 0xc0c   : > { %p4863_p4 = scmp.ne.s32.totalorder %s5974_s17, %s4862_s18  ;;  %p4867_p2 = scmp.lt.s32.totalorder %s5974_s17, %s6030_s9 }
 0xc0d   : > { %p4868_p7 = scmp.lt.s32.totalorder %s4866_s25, %s4862_s18 }
 0xc0e   : > { %p4864_p12 = pnand %p4863_p4, %p6060_p11 }
 0xc0f   : > { %p4869_p8 = por %p4868_p7, %p4867_p2 }
 0xc10   : > { %p4865_p6 = pneg %p4864_p12 }
 0xc12   : > { %p4870_p10 = pnand %p4869_p8, %p4865_p6 }
 0xc14   : > { %4873 = shalt.err (!%p4870_p10)
}
 0xc15   : > { %s4937_s26 = smov 128   ;;  %s4938_s21 = smov 8  }
 0xc16   : > { %4489 = dma.vmem_to_hbm [thread:$0]  (%p6060_p11), %s5976_s19, 2048, %s5974_s17, %s3496_s1, %s4937_s26, %s4937_s26, %s4938_s21  }
 0xc17 PF: > { %s3524_s15 = sand.u32 1, %s4912_s30   ;;  %p6061_p13 = scmp.ne.s32.totalorder %s6048_s13, 0 }
 0xc18   : > { %p6062_p0 = scmp.ge.s32.totalorder %s4924_s12, 2  ;;  %s3525_s20 = scalar_lea.sflag [#allocation5], %s3524_s15 }
 0xc1a   : > { %p4512_p5 = pnand %p6062_p0, %p6061_p13 }
 0xc1c   : > { %p4513_p9 = pneg %p4512_p5 }
 0xc1e   : > { %4907 = dma.done.wait (%p4513_p9), %s3525_s20, 2048  }
 0xc1f   : > { %4909 = vsyncadd (%p4513_p9), %s3525_s20, 4294965248  ;;  %p25_p1 = scmp.ge.s32.totalorder %s5097_s22, 4   ;;  %s6063_s30 = smov %s4916_s10 }
 0xc20   : > { %s6064_s10 = smov %s4920_s11  ;;  %s6065_s11 = smov %s5109_s27 }
 0xc21   : > { %s6066_s12 = smov %s5097_s22  ;;  %27 = sbr.rel (!%p25_p1) target bundleno = 12 (0xc), region = 141 }
 0xc26   :  { %3530 = vsyncpa [#allocation4], 1 }
 0xc27   :  { %3532 = vsyncpa [#allocation4 + $0x1], 1 }
 0xc28   :  { %3533 = vsyncpa [#allocation7], 1 }
 0xc29   :  { %3534 = vsyncpa [#allocation10], 1 }
 0xc2a   :  { %3535 = vsyncpa [#allocation13], 1 }
 0xc2b   :  { %3536 = vsyncpa [#allocation5], 1 }
 0xc2c   :  { %3538 = vsyncpa [#allocation5 + $0x1], 1 }

</bundles_post_ra>
